<compile_context>
chip_gen: v7x
topology: tpu7x:2x2x1
jax: 0.10.0
libtpu: 0.0.40
codegen_flags: <defaults>
</compile_context>

<pallas_src>
import jax
import jax.numpy as jnp
from jax.experimental import pallas as pl
from jax.experimental.pallas import tpu as pltpu

KH = KW = 3  # depthwise kernel size (padding='same')


def _make_residual_kernel(B_TILE, H, W, C):
    WC = W * C          # packed lane width of one image row
    WPC = (W + 2) * C   # packed lane width including the 1-pixel halo

    def kernel(x_ref, w_ref, bias_ref, scale_ref, shift_ref, o_ref, pad_ref):
        # x_ref    : (B_TILE, H, W*C)  packed NHWC input (channel fastest in last dim)
        # w_ref    : (KH, KW, W*C)     depthwise conv weights tiled across W
        # bias_ref, scale_ref, shift_ref : (1, W*C)  conv bias / folded BN affine
        # o_ref    : (B_TILE, H, W*C)  output = BN(GELU(dwconv(x))) + x
        # pad_ref  : (H+2, (W+2)*C)    f32 VMEM scratch holding the zero halo
        inv_sqrt2 = jnp.float32(0.7071067811865476)

        # zero the halo scratch once per grid step (cheap VMEM fill);
        # the interior is fully overwritten per image below.
        pad_ref[...] = jnp.zeros((H + 2, WPC), jnp.float32)

        for b in range(B_TILE):  # static, fully unrolled
            xin = x_ref[b].astype(jnp.float32)          # (H, W*C), single HBM read
            pad_ref[1:H + 1, C:C + WC] = xin            # place image inside the halo

            # init accumulator with the conv bias (saves a separate add pass)
            acc = jnp.broadcast_to(bias_ref[...], (H, WC)).astype(jnp.float32)

            # depthwise 3x3 'same' conv: 9 shifted multiply-accumulates (VPU);
            # the column shift is a lane offset (dw*C) in the packed layout.
            for dh in range(KH):
                for dw in range(KW):
                    acc = acc + pad_ref[dh:dh + H, dw * C:dw * C + WC] * w_ref[dh, dw, :]

            # exact GELU (matches PyTorch nn.GELU default)
            g = 0.5 * acc * (1.0 + jax.lax.erf(acc * inv_sqrt2))

            # eval-mode BatchNorm2d folded to affine, then the residual add
            y = g * scale_ref[...] + shift_ref[...] + xin
            o_ref[b] = y.astype(o_ref.dtype)

    return kernel


def _pick_b_tile(N, H, W, C, budget_bytes=8 * 1024 * 1024):
    """Largest batch tile whose double-buffered in+out blocks fit the budget,
    while keeping >= 2 grid steps when N >= 2 (so both v7x cores get work)."""
    per_img = H * W * C * 4
    best = 1
    for bt in range(1, N + 1):
        if N % bt:
            continue
        if N >= 2 and (N // bt) < 2:
            continue
        if 4 * bt * per_img <= budget_bytes:  # 2 buffers x (in + out)
            best = bt
    return best


def residual_forward_nhwc(x_nhwc, w_oihw, cbias, gamma, beta, run_mean, run_var,
                          eps=1e-5):
    """Residual(fn)(x) in NHWC, fn = dwconv3x3 -> GELU -> BatchNorm2d(eval)."""
    N, H, W, C = x_nhwc.shape
    WC = W * C
    B_TILE = _pick_b_tile(N, H, W, C)

    # fold BatchNorm (eval) into an affine transform
    scale = gamma / jnp.sqrt(run_var + eps)
    shift = beta - run_mean * scale
    # PyTorch depthwise weight (C, 1, KH, KW) -> (KH, KW, C)
    w_hwc = jnp.transpose(w_oihw[:, 0, :, :], (1, 2, 0))

    # tile per-channel params across W so they line up with the packed W*C lanes
    w_packed = jnp.tile(w_hwc, (1, 1, W))              # (KH, KW, W*C)
    bias_packed = jnp.tile(cbias, W).reshape(1, WC)
    scale_packed = jnp.tile(scale, W).reshape(1, WC)
    shift_packed = jnp.tile(shift, W).reshape(1, WC)

    x_packed = x_nhwc.reshape(N, H, WC)                # free row-major reshape

    kernel = _make_residual_kernel(B_TILE, H, W, C)
    out_packed = pl.pallas_call(
        kernel,
        out_shape=jax.ShapeDtypeStruct((N, H, WC), x_nhwc.dtype),
        grid=(N // B_TILE,),
        in_specs=[
            pl.BlockSpec((B_TILE, H, WC), lambda n: (n, 0, 0)),
            pl.BlockSpec((KH, KW, WC), lambda n: (0, 0, 0)),
            pl.BlockSpec((1, WC), lambda n: (0, 0)),
            pl.BlockSpec((1, WC), lambda n: (0, 0)),
            pl.BlockSpec((1, WC), lambda n: (0, 0)),
        ],
        out_specs=pl.BlockSpec((B_TILE, H, WC), lambda n: (n, 0, 0)),
        scratch_shapes=[pltpu.VMEM((H + 2, (W + 2) * C), jnp.float32)],
        compiler_params=pltpu.CompilerParams(
            dimension_semantics=("parallel",),
            vmem_limit_bytes=32 * 1024 * 1024,
        ),
    )(x_packed, w_packed, bias_packed, scale_packed, shift_packed)

    return out_packed.reshape(N, H, W, C)


def residual_forward(x_nchw, w_oihw, cbias, gamma, beta, run_mean, run_var, eps=1e-5):
    """PyTorch-layout (NCHW) entry point."""
    # TODO(synk): in a ConvMixer chain keep activations NHWC end-to-end; these two
    # transposes are interface plumbing only (each costs a full HBM round trip).
    x = jnp.transpose(x_nchw, (0, 2, 3, 1))
    out = residual_forward_nhwc(x, w_oihw, cbias, gamma, beta, run_mean, run_var, eps)
    return jnp.transpose(out, (0, 3, 1, 2))


def reference(x_nchw, w_oihw, cbias, gamma, beta, run_mean, run_var, eps=1e-5):
    """Pure-JAX reference of the same forward pass (NCHW, like PyTorch)."""
    C = x_nchw.shape[1]
    y = jax.lax.conv_general_dilated(
        x_nchw, w_oihw, window_strides=(1, 1), padding="SAME",
        dimension_numbers=("NCHW", "OIHW", "NCHW"), feature_group_count=C,
        precision=jax.lax.Precision.HIGHEST)
    y = y + cbias[None, :, None, None]
    y = 0.5 * y * (1.0 + jax.lax.erf(y / jnp.sqrt(2.0)))
    y = ((y - run_mean[None, :, None, None])
         / jnp.sqrt(run_var[None, :, None, None] + eps)
         * gamma[None, :, None, None] + beta[None, :, None, None])
    return y + x_nchw


if __name__ == "__main__":
    # small shapes: batch=2, channels=32, spatial=16x16 (PyTorch NCHW input)
    N, C, H, W = 2, 32, 16, 16

    key = jax.random.PRNGKey(0)
    kx, kw, kb, kg, kbe, km, kv = jax.random.split(key, 7)

    x = jax.random.normal(kx, (N, C, H, W), jnp.float32)
    w = 0.1 * jax.random.normal(kw, (C, 1, KH, KW), jnp.float32)    # depthwise weight
    cbias = 0.01 * jax.random.normal(kb, (C,), jnp.float32)          # conv bias
    gamma = 1.0 + 0.1 * jax.random.normal(kg, (C,), jnp.float32)     # BN weight
    beta = 0.1 * jax.random.normal(kbe, (C,), jnp.float32)           # BN bias
    run_mean = 0.1 * jax.random.normal(km, (C,), jnp.float32)        # BN running_mean
    run_var = 1.0 + 0.5 * jax.random.uniform(kv, (C,), jnp.float32)  # BN running_var

    out = residual_forward(x, w, cbias, gamma, beta, run_mean, run_var)
    out = jax.block_until_ready(out)

    ref = reference(x, w, cbias, gamma, beta, run_mean, run_var)
    assert out.shape == (N, C, H, W)
    err = float(jnp.max(jnp.abs(out - ref)))
    assert jnp.allclose(out, ref, atol=1e-4, rtol=1e-4), err

    print("KERNEL_OK")
</pallas_src>

<mosaic_0001>
module attributes {stable_mosaic.version = 11 : i64} {
  func.func @kernel(%arg0: i32, %arg1: memref<1x16x512xf32, #tpu.memory_space<vmem>>, %arg2: memref<3x3x512xf32, #tpu.memory_space<vmem>>, %arg3: memref<1x512xf32, #tpu.memory_space<vmem>>, %arg4: memref<1x512xf32, #tpu.memory_space<vmem>>, %arg5: memref<1x512xf32, #tpu.memory_space<vmem>>, %arg6: memref<1x16x512xf32, #tpu.memory_space<vmem>>, %arg7: memref<18x576xf32, #tpu.memory_space<vmem>>) attributes {dimension_semantics = [#tpu.dimension_semantics<parallel>], iteration_bounds = array<i64: 2>, scalar_prefetch = 0 : i64, scratch_operands = 1 : i64, tpu.core_type = #tpu.core_type<tc>, window_params = [{transform_indices = @transform_0, window_bounds = array<i64: 1, 16, 512>}, {pipeline_mode = #tpu.pipeline_mode<synchronous>, transform_indices = @transform_1, window_bounds = array<i64: 3, 3, 512>}, {pipeline_mode = #tpu.pipeline_mode<synchronous>, transform_indices = @transform_2, window_bounds = array<i64: 1, 512>}, {pipeline_mode = #tpu.pipeline_mode<synchronous>, transform_indices = @transform_3, window_bounds = array<i64: 1, 512>}, {pipeline_mode = #tpu.pipeline_mode<synchronous>, transform_indices = @transform_4, window_bounds = array<i64: 1, 512>}, {transform_indices = @transform_5, window_bounds = array<i64: 1, 16, 512>}]} {
    %cst = arith.constant 0.000000e+00 : f32
    %0 = vector.broadcast %cst : f32 to vector<18x576xf32>
    %c0 = arith.constant 0 : index
    %c0_0 = arith.constant 0 : index
    %1 = vector.load %arg7[%c0, %c0_0] : memref<18x576xf32, #tpu.memory_space<vmem>>, vector<18x576xf32>
    tpu.vector_store %arg7[%c0, %c0_0], %0 {strides = array<i32>} : memref<18x576xf32, #tpu.memory_space<vmem>>, vector<18x576xf32>,
    %c0_1 = arith.constant 0 : index
    %c0_2 = arith.constant 0 : index
    %c0_3 = arith.constant 0 : index
    %2 = vector.load %arg1[%c0_1, %c0_2, %c0_3] : memref<1x16x512xf32, #tpu.memory_space<vmem>>, vector<1x16x512xf32>
    %3 = vector.shape_cast %2 : vector<1x16x512xf32> to vector<16x512xf32>
    %c1 = arith.constant 1 : index
    %c32 = arith.constant 32 : index
    %4 = vector.load %arg7[%c1, %c32] : memref<18x576xf32, #tpu.memory_space<vmem>>, vector<16x512xf32>
    tpu.vector_store %arg7[%c1, %c32], %3 {strides = array<i32>} : memref<18x576xf32, #tpu.memory_space<vmem>>, vector<16x512xf32>,
    %c0_4 = arith.constant 0 : index
    %c0_5 = arith.constant 0 : index
    %5 = vector.load %arg3[%c0_4, %c0_5] : memref<1x512xf32, #tpu.memory_space<vmem>>, vector<1x512xf32>
    %6 = vector.shape_cast %5 : vector<1x512xf32> to vector<1x512xf32>
    %7 = vector.broadcast %6 : vector<1x512xf32> to vector<16x512xf32>
    %c0_6 = arith.constant 0 : index
    %c0_7 = arith.constant 0 : index
    %8 = vector.load %arg7[%c0_6, %c0_7] : memref<18x576xf32, #tpu.memory_space<vmem>>, vector<16x512xf32>
    %c0_8 = arith.constant 0 : index
    %c0_9 = arith.constant 0 : index
    %c0_10 = arith.constant 0 : index
    %9 = vector.load %arg2[%c0_8, %c0_9, %c0_10] : memref<3x3x512xf32, #tpu.memory_space<vmem>>, vector<1x1x512xf32>
    %10 = vector.shape_cast %9 : vector<1x1x512xf32> to vector<512xf32>
    %11 = vector.shape_cast %10 : vector<512xf32> to vector<1x512xf32>
    %12 = vector.broadcast %11 : vector<1x512xf32> to vector<16x512xf32>
    %13 = arith.mulf %8, %12 : vector<16x512xf32>
    %14 = arith.addf %7, %13 : vector<16x512xf32>
    %c0_11 = arith.constant 0 : index
    %c32_12 = arith.constant 32 : index
    %15 = vector.load %arg7[%c0_11, %c32_12] : memref<18x576xf32, #tpu.memory_space<vmem>>, vector<16x512xf32>
    %c0_13 = arith.constant 0 : index
    %c1_14 = arith.constant 1 : index
    %c0_15 = arith.constant 0 : index
    %16 = vector.load %arg2[%c0_13, %c1_14, %c0_15] : memref<3x3x512xf32, #tpu.memory_space<vmem>>, vector<1x1x512xf32>
    %17 = vector.shape_cast %16 : vector<1x1x512xf32> to vector<512xf32>
    %18 = vector.shape_cast %17 : vector<512xf32> to vector<1x512xf32>
    %19 = vector.broadcast %18 : vector<1x512xf32> to vector<16x512xf32>
    %20 = arith.mulf %15, %19 : vector<16x512xf32>
    %21 = arith.addf %14, %20 : vector<16x512xf32>
    %c0_16 = arith.constant 0 : index
    %c64 = arith.constant 64 : index
    %22 = vector.load %arg7[%c0_16, %c64] : memref<18x576xf32, #tpu.memory_space<vmem>>, vector<16x512xf32>
    %c0_17 = arith.constant 0 : index
    %c2 = arith.constant 2 : index
    %c0_18 = arith.constant 0 : index
    %23 = vector.load %arg2[%c0_17, %c2, %c0_18] : memref<3x3x512xf32, #tpu.memory_space<vmem>>, vector<1x1x512xf32>
    %24 = vector.shape_cast %23 : vector<1x1x512xf32> to vector<512xf32>
    %25 = vector.shape_cast %24 : vector<512xf32> to vector<1x512xf32>
    %26 = vector.broadcast %25 : vector<1x512xf32> to vector<16x512xf32>
    %27 = arith.mulf %22, %26 : vector<16x512xf32>
    %28 = arith.addf %21, %27 : vector<16x512xf32>
    %c1_19 = arith.constant 1 : index
    %c0_20 = arith.constant 0 : index
    %29 = vector.load %arg7[%c1_19, %c0_20] : memref<18x576xf32, #tpu.memory_space<vmem>>, vector<16x512xf32>
    %c1_21 = arith.constant 1 : index
    %c0_22 = arith.constant 0 : index
    %c0_23 = arith.constant 0 : index
    %30 = vector.load %arg2[%c1_21, %c0_22, %c0_23] : memref<3x3x512xf32, #tpu.memory_space<vmem>>, vector<1x1x512xf32>
    %31 = vector.shape_cast %30 : vector<1x1x512xf32> to vector<512xf32>
    %32 = vector.shape_cast %31 : vector<512xf32> to vector<1x512xf32>
    %33 = vector.broadcast %32 : vector<1x512xf32> to vector<16x512xf32>
    %34 = arith.mulf %29, %33 : vector<16x512xf32>
    %35 = arith.addf %28, %34 : vector<16x512xf32>
    %c1_24 = arith.constant 1 : index
    %c32_25 = arith.constant 32 : index
    %36 = vector.load %arg7[%c1_24, %c32_25] : memref<18x576xf32, #tpu.memory_space<vmem>>, vector<16x512xf32>
    %c1_26 = arith.constant 1 : index
    %c1_27 = arith.constant 1 : index
    %c0_28 = arith.constant 0 : index
    %37 = vector.load %arg2[%c1_26, %c1_27, %c0_28] : memref<3x3x512xf32, #tpu.memory_space<vmem>>, vector<1x1x512xf32>
    %38 = vector.shape_cast %37 : vector<1x1x512xf32> to vector<512xf32>
    %39 = vector.shape_cast %38 : vector<512xf32> to vector<1x512xf32>
    %40 = vector.broadcast %39 : vector<1x512xf32> to vector<16x512xf32>
    %41 = arith.mulf %36, %40 : vector<16x512xf32>
    %42 = arith.addf %35, %41 : vector<16x512xf32>
    %c1_29 = arith.constant 1 : index
    %c64_30 = arith.constant 64 : index
    %43 = vector.load %arg7[%c1_29, %c64_30] : memref<18x576xf32, #tpu.memory_space<vmem>>, vector<16x512xf32>
    %c1_31 = arith.constant 1 : index
    %c2_32 = arith.constant 2 : index
    %c0_33 = arith.constant 0 : index
    %44 = vector.load %arg2[%c1_31, %c2_32, %c0_33] : memref<3x3x512xf32, #tpu.memory_space<vmem>>, vector<1x1x512xf32>
    %45 = vector.shape_cast %44 : vector<1x1x512xf32> to vector<512xf32>
    %46 = vector.shape_cast %45 : vector<512xf32> to vector<1x512xf32>
    %47 = vector.broadcast %46 : vector<1x512xf32> to vector<16x512xf32>
    %48 = arith.mulf %43, %47 : vector<16x512xf32>
    %49 = arith.addf %42, %48 : vector<16x512xf32>
    %c2_34 = arith.constant 2 : index
    %c0_35 = arith.constant 0 : index
    %50 = vector.load %arg7[%c2_34, %c0_35] : memref<18x576xf32, #tpu.memory_space<vmem>>, vector<16x512xf32>
    %c2_36 = arith.constant 2 : index
    %c0_37 = arith.constant 0 : index
    %c0_38 = arith.constant 0 : index
    %51 = vector.load %arg2[%c2_36, %c0_37, %c0_38] : memref<3x3x512xf32, #tpu.memory_space<vmem>>, vector<1x1x512xf32>
    %52 = vector.shape_cast %51 : vector<1x1x512xf32> to vector<512xf32>
    %53 = vector.shape_cast %52 : vector<512xf32> to vector<1x512xf32>
    %54 = vector.broadcast %53 : vector<1x512xf32> to vector<16x512xf32>
    %55 = arith.mulf %50, %54 : vector<16x512xf32>
    %56 = arith.addf %49, %55 : vector<16x512xf32>
    %c2_39 = arith.constant 2 : index
    %c32_40 = arith.constant 32 : index
    %57 = vector.load %arg7[%c2_39, %c32_40] : memref<18x576xf32, #tpu.memory_space<vmem>>, vector<16x512xf32>
    %c2_41 = arith.constant 2 : index
    %c1_42 = arith.constant 1 : index
    %c0_43 = arith.constant 0 : index
    %58 = vector.load %arg2[%c2_41, %c1_42, %c0_43] : memref<3x3x512xf32, #tpu.memory_space<vmem>>, vector<1x1x512xf32>
    %59 = vector.shape_cast %58 : vector<1x1x512xf32> to vector<512xf32>
    %60 = vector.shape_cast %59 : vector<512xf32> to vector<1x512xf32>
    %61 = vector.broadcast %60 : vector<1x512xf32> to vector<16x512xf32>
    %62 = arith.mulf %57, %61 : vector<16x512xf32>
    %63 = arith.addf %56, %62 : vector<16x512xf32>
    %c2_44 = arith.constant 2 : index
    %c64_45 = arith.constant 64 : index
    %64 = vector.load %arg7[%c2_44, %c64_45] : memref<18x576xf32, #tpu.memory_space<vmem>>, vector<16x512xf32>
    %c2_46 = arith.constant 2 : index
    %c2_47 = arith.constant 2 : index
    %c0_48 = arith.constant 0 : index
    %65 = vector.load %arg2[%c2_46, %c2_47, %c0_48] : memref<3x3x512xf32, #tpu.memory_space<vmem>>, vector<1x1x512xf32>
    %66 = vector.shape_cast %65 : vector<1x1x512xf32> to vector<512xf32>
    %67 = vector.shape_cast %66 : vector<512xf32> to vector<1x512xf32>
    %68 = vector.broadcast %67 : vector<1x512xf32> to vector<16x512xf32>
    %69 = arith.mulf %64, %68 : vector<16x512xf32>
    %70 = arith.addf %63, %69 : vector<16x512xf32>
    %cst_49 = arith.constant 5.000000e-01 : f32
    %71 = vector.broadcast %cst_49 : f32 to vector<16x512xf32>
    %72 = arith.mulf %71, %70 : vector<16x512xf32>
    %cst_50 = arith.constant 0.707106769 : f32
    %73 = vector.broadcast %cst_50 : f32 to vector<16x512xf32>
    %74 = arith.mulf %70, %73 : vector<16x512xf32>
    %75 = math.erf %74 : vector<16x512xf32>
    %cst_51 = arith.constant 1.000000e+00 : f32
    %76 = vector.broadcast %cst_51 : f32 to vector<16x512xf32>
    %77 = arith.addf %76, %75 : vector<16x512xf32>
    %78 = arith.mulf %72, %77 : vector<16x512xf32>
    %c0_52 = arith.constant 0 : index
    %c0_53 = arith.constant 0 : index
    %79 = vector.load %arg4[%c0_52, %c0_53] : memref<1x512xf32, #tpu.memory_space<vmem>>, vector<1x512xf32>
    %80 = vector.broadcast %79 : vector<1x512xf32> to vector<16x512xf32>
    %81 = arith.mulf %78, %80 : vector<16x512xf32>
    %c0_54 = arith.constant 0 : index
    %c0_55 = arith.constant 0 : index
    %82 = vector.load %arg5[%c0_54, %c0_55] : memref<1x512xf32, #tpu.memory_space<vmem>>, vector<1x512xf32>
    %83 = vector.broadcast %82 : vector<1x512xf32> to vector<16x512xf32>
    %84 = arith.addf %81, %83 : vector<16x512xf32>
    %85 = arith.addf %84, %3 : vector<16x512xf32>
    %c0_56 = arith.constant 0 : index
    %c0_57 = arith.constant 0 : index
    %c0_58 = arith.constant 0 : index
    %86 = vector.load %arg6[%c0_56, %c0_57, %c0_58] : memref<1x16x512xf32, #tpu.memory_space<vmem>>, vector<1x16x512xf32>
    %87 = vector.shape_cast %86 : vector<1x16x512xf32> to vector<16x512xf32>
    %88 = vector.shape_cast %85 : vector<16x512xf32> to vector<1x16x512xf32>
    tpu.vector_store %arg6[%c0_56, %c0_57, %c0_58], %88 {strides = array<i32>} : memref<1x16x512xf32, #tpu.memory_space<vmem>>, vector<1x16x512xf32>,
    return
  }
  func.func @transform_0(%arg0: i32) -> (i32, i32, i32) {
    %c0_i32 = arith.constant 0 : i32
    %c0_i32_0 = arith.constant 0 : i32
    %c0_i32_1 = arith.constant 0 : i32
    return %arg0, %c0_i32, %c0_i32_0 : i32, i32, i32
  }
  func.func @transform_1(%arg0: i32) -> (i32, i32, i32) {
    %c0_i32 = arith.constant 0 : i32
    %c0_i32_0 = arith.constant 0 : i32
    %c0_i32_1 = arith.constant 0 : i32
    %c0_i32_2 = arith.constant 0 : i32
    return %c0_i32, %c0_i32_0, %c0_i32_1 : i32, i32, i32
  }
  func.func @transform_2(%arg0: i32) -> (i32, i32) {
    %c0_i32 = arith.constant 0 : i32
    %c0_i32_0 = arith.constant 0 : i32
    %c0_i32_1 = arith.constant 0 : i32
    return %c0_i32, %c0_i32_0 : i32, i32
  }
  func.func @transform_3(%arg0: i32) -> (i32, i32) {
    %c0_i32 = arith.constant 0 : i32
    %c0_i32_0 = arith.constant 0 : i32
    %c0_i32_1 = arith.constant 0 : i32
    return %c0_i32, %c0_i32_0 : i32, i32
  }
  func.func @transform_4(%arg0: i32) -> (i32, i32) {
    %c0_i32 = arith.constant 0 : i32
    %c0_i32_0 = arith.constant 0 : i32
    %c0_i32_1 = arith.constant 0 : i32
    return %c0_i32, %c0_i32_0 : i32, i32
  }
  func.func @transform_5(%arg0: i32) -> (i32, i32, i32) {
    %c0_i32 = arith.constant 0 : i32
    %c0_i32_0 = arith.constant 0 : i32
    %c0_i32_1 = arith.constant 0 : i32
    return %arg0, %c0_i32, %c0_i32_0 : i32, i32, i32
  }
}

</mosaic_0001>

<bundles_post_ra>
// kernel: tpu_custom_call.1
= control target key start
LH: loop header
LB: loop body
LE: loop exit
PB: predicated region body
PF: predicated region fallthrough
CT: control target
= control target key end

     0   :  { %10 = vsyncpa [#allocation4], 0  ;;  %s2764_s0 = inlined_call_operand.hbm [shape: f32[2,16,512], index: 0, kind: input, shape index: {}]   ;;  %s2765_s1 = inlined_call_operand.hbm [shape: f32[3,3,512], index: 1, kind: input, shape index: {}]   ;;  %s2766_s2 = inlined_call_operand.vmem [shape: f32[1,512], index: 2, kind: input, shape index: {}]   ;;  %s2767_s3 = inlined_call_operand.vmem [shape: f32[1,512], index: 3, kind: input, shape index: {}]   ;;  %s2768_s4 = inlined_call_operand.vmem [shape: f32[1,512], index: 4, kind: input, shape index: {}]   ;;  %s2769_s5 = inlined_call_operand.hbm [shape: f32[2,16,512], index: 5, kind: output, shape index: {}]  }
   0x1   :  { %12 = vsyncpa [#allocation4 + $0x1], 0 }
   0x2   :  { %13 = vsyncpa [#allocation7], 0 }
   0x3   :  { %14 = vsyncpa [#allocation5], 0 }
   0x4   :  { %16 = vsyncpa [#allocation5 + $0x1], 0  ;;  %s1863_s18 = smov 0   ;;  %s1865_s19 = smov 0  }
   0x5   :  { %s1867_s20 = smov 0   ;;  %s1869_s21 = smov 0  }
   0x6 LB: > { %s1884_s22 = sadd.s32 4294967295, %s1819_s21   ;;  %s1583_s23 = sadd.s32 4294967294, %s1819_s21   ;;  %s1819_s21 = sphi %s1869_s21, %s2822_s21   ;;  %s1815_s20 = sphi %s1867_s20, %s2821_s20   ;;  %s1811_s19 = sphi %s1865_s19, %s2820_s19   ;;  %s1807_s18 = sphi %s1863_s18, %s2819_s18  }
   0x7   : > { %p42_p0 = scmp.ne.s32.totalorder %s1811_s19, %s1807_s18  ;;  %p2770_p1 = scmp.eq.s32.totalorder %s1884_s22, 0 }
   0x8   : > { %p156_p3 = scmp.eq.s32.totalorder %s1583_s23, 1  ;;  %p1584_p5 = scmp.ge.s32.totalorder %s1819_s21, 1 }
   0x9   : > { %p1893_p4 = por %p2770_p1, %p42_p0  ;;  %p163_p7 = scmp.lt.s32.totalorder %s1819_s21, 3 }
   0xa   : > { %p1898_p6 = por %p156_p3, %p42_p0  ;;  %s1821_s27 = smov [#allocation6]  }
   0xb   : > { %s2776_s24 = scalar_select %p1893_p4, 1, 0 }
   0xc   : > { %s2777_s25 = scalar_select %p1898_p6, 1, 0 }
   0xd   : > { %p1903_p8 = pnand %p1584_p5, %p163_p7  ;;  %s175_s28 = sshll.u32 %s1821_s27, 4  ;;  %s1907_s28 = int_to_ptr.vmem [resolvable:$true] %s175_s28 }
   0xe   : > { %s1919_s30 = sadd.s32 1, %s1819_s21   ;;  %s29_s6 = sadd.s32 1, %s1815_s20 }
   0xf   : > { %s2778_s26 = scalar_select %p1903_p8, 1, 0 }
  0x10   : > { %p1609_p9 = pneg %p1903_p8  ;;  %s26_s7 = ssub.s32 %s1819_s21, %s1919_s30 }
  0x11   : > { %s1691_s10 = scalar_lea.hbm %s2765_s1, 768 }
  0x12   : > { %p1914_p11 = pnand %p1609_p9, %p2770_p1  ;;  %p1692_p12 = scmp.ne.s32.totalorder %s2765_s1, %s1691_s10 }
  0x13   : > { %p1698_p5 = scmp.lt.u32.totalorder %s1691_s10, %s2765_s1 }
  0x14   : > { %p1693_p13 = pneg %p1914_p11 }
  0x16   : > { %p1694_p0 = pnand %p1693_p13, %p1692_p12 }
  0x18   : > { %p1695_p3 = pneg %p1694_p0 }
  0x1a   : > { %p1700_p7 = pnand %p1698_p5, %p1695_p3 }
  0x1c   : > { %1703 = shalt.err (!%p1700_p7)
}
  0x1d   : > { %s1704_s15 = scalar_lea.vmem %s1907_s28, 768  ;;  %p1712_p2 = scmp.lt.s32.totalorder %s1907_s28, %s1907_s28 }
  0x1e   : > { %p1705_p9 = scmp.ne.s32.totalorder %s1907_s28, %s1704_s15  ;;  %p1713_p6 = scmp.lt.s32.totalorder %s1704_s15, %s1704_s15 }
  0x20   : > { %p1707_p10 = pnand %p1705_p9, %p1693_p13  ;;  %p1714_p4 = por %p1713_p6, %p1712_p2 }
  0x22   : > { %p1708_p1 = pneg %p1707_p10 }
  0x24   : > { %p1715_p8 = pnand %p1714_p4, %p1708_p1 }
  0x26   : > { %1718 = shalt.err (!%p1715_p8)
}
  0x27   : > { %s1822_s16 = smov 256   ;;  %s1823_s17 = smov 16  }
  0x28   : > { %1612 = dma.hbm_to_vmem [thread:$0]  (!%p1914_p11), %s2765_s1, 768, %s1907_s28, [#allocation7], %s1822_s16, %s1822_s16, %s1823_s17  }
  0x29   : > { %p27_p2 = scmp.eq.s32.totalorder %s26_s7, 0  ;;  %p36_p1 = scmp.ne.s32.totalorder %s1815_s20, %s1811_s19 }
  0x2a   : > { %p37_p4 = scmp.eq.s32.totalorder %s1819_s21, 0  ;;  %p1622_p6 = scmp.lt.s32.totalorder %s1819_s21, 2 }
  0x2b   : > { %s1950_s8 = scalar_select %p27_p2, %s1815_s20, %s29_s6  }
  0x2c   : > { %p38_p8 = por %p37_p4, %p36_p1  ;;  %p2780_p10 = scmp.eq.s32.totalorder %s1884_s22, 1 }
  0x2d   : > { %s198_s10 = sand.u32 1, %s1815_s20   ;;  %s1599_s11 = sshll.u32 %s1819_s21, 10 }
  0x2e   : > { %p1954_p12 = por %p2780_p10, %p36_p1  ;;  %s1587_s12 = sshll.u32 %s198_s10, 6 }
  0x2f   : > { %s1963_s14 = scalar_lea.hbm %s2764_s0, %s1599_s11  ;;  %s202_s28 = scalar_lea.vmem [#allocation3], %s1587_s12 }
  0x30   : > { %s209_s6 = sshll.u32 %s202_s28, 4  ;;  %p1965_p11 = pnand %p1622_p6, %p38_p8  ;;  %s1969_s6 = int_to_ptr.vmem [resolvable:$true] %s209_s6 }
  0x31   : > { %s1971_s15 = scalar_lea.sflag [#allocation4], %s198_s10  ;;  %s1719_s16 = scalar_lea.hbm %s1963_s14, 1024 }
  0x32   : > { %p1720_p13 = scmp.ne.s32.totalorder %s1963_s14, %s1719_s16  ;;  %p1721_p0 = pneg %p1965_p11 }
  0x33   : > { %s1724_s27 = scalar_lea.hbm %s2764_s0, 2048  ;;  %p1725_p7 = scmp.lt.u32.totalorder %s1963_s14, %s2764_s0 }
  0x34   : > { %p1722_p3 = pnand %p1721_p0, %p1720_p13  ;;  %p1726_p9 = scmp.lt.u32.totalorder %s1724_s27, %s1719_s16 }
  0x35   : > { %p1728_p1 = scmp.lt.u32.totalorder %s1719_s16, %s1963_s14 }
  0x36   : > { %p1723_p5 = pneg %p1722_p3  ;;  %p1727_p2 = por %p1726_p9, %p1725_p7 }
  0x38   : > { %p1729_p4 = por %p1728_p1, %p1727_p2 }
  0x3a   : > { %p1730_p6 = pnand %p1729_p4, %p1723_p5 }
  0x3c   : > { %1733 = shalt.err (!%p1730_p6)
}
  0x3d   : > { %s1734_s10 = scalar_lea.vmem %s1969_s6, 1024  ;;  %s1824_s29 = smov [#allocation3]  }
  0x3e   : > { %p1735_p8 = scmp.ne.s32.totalorder %s1969_s6, %s1734_s10  ;;  %s1739_s13 = sshll.u32 %s1824_s29, 4  ;;  %s1740_s13 = int_to_ptr.vmem [resolvable:$false] %s1739_s13 }
  0x3f   : > { %s1741_s28 = scalar_lea.vmem %s1740_s13, 2048  ;;  %p1742_p3 = scmp.lt.s32.totalorder %s1969_s6, %s1740_s13 }
  0x40   : > { %p1737_p10 = pnand %p1735_p8, %p1721_p0  ;;  %p1743_p7 = scmp.lt.s32.totalorder %s1741_s28, %s1734_s10 }
  0x42   : > { %p1738_p13 = pneg %p1737_p10  ;;  %p1744_p9 = por %p1743_p7, %p1742_p3 }
  0x44   : > { %p1745_p2 = pnand %p1744_p9, %p1738_p13 }
  0x46   : > { %1748 = shalt.err (!%p1745_p2)
}
  0x47   : > { %s1825_s16 = smov 512   ;;  %s1826_s17 = smov 32  }
  0x48   : > { %1616 = dma.hbm_to_vmem [thread:$0]  (!%p1965_p11), %s1963_s14, 1024, %s1969_s6, %s1971_s15, %s1825_s16, %s1825_s16, %s1826_s17  }
  0x49   : > { %p2783_p0 = scmp.ne.s32.totalorder %s2778_s26, 0 }
  0x4b   : > { %221 = sbr.rel (%p2783_p0) target bundleno = 506 (0x1fa), region = 40 }
  0x52   : > { %s2002_s23 = sand.u32 1, %s1811_s19   ;;  %p2784_p5 = scmp.ne.s32.totalorder %s2776_s24, 0 }
  0x53   : > { %s1591_s27 = sshll.u32 %s2002_s23, 6  ;;  %s224_s11 = scalar_lea.sflag [#allocation4], %s2002_s23 }
  0x54   : > { %s2008_s12 = scalar_lea.vmem [#allocation3], %s1591_s27 }
  0x55   : > { %1794 = dma.done.wait (%p2784_p5), %s224_s11, 1024  }
  0x56   : > { %1796 = vsyncadd (%p2784_p5), %s224_s11, 4294966272  ;;  %p2785_p11 = scmp.eq.s32.totalorder %s1884_s22, 0 }
  0x58   : > { %1798 = dma.done.wait (%p2785_p11), [#allocation7], 768   ;;  %p2786_p1 = pmov %p2785_p11 }
  0x59   : > { %v1827_v0 = vmov 0.0   ;;  %vm262_vm0 = vcmask 523264   ;;  %v277_v1 = vld [vmem:[%s2008_s12 + $0x10] sm:$0xff]  ;;  %v275_v2 = vld [vmem:[%s2008_s12] sm:$0xff]  ;;  %v278_v3 = vld [vmem:[%s2008_s12 + $0x18] sm:$0xff]  ;;  %s1828_s24 = smov 32   ;;  %v375_v19 = vlaneseq }
  0x5a   : > { %1800 = vsyncadd (%p2786_p1), [#allocation7], 4294966528  ;;  %258 = vst [vmem:[#allocation2] sm:$0xff] %v1827_v0  ;;  %v294_v4 = vrot.slane %v277_v1, 7  ;;  %v292_v5 = vrot.slane %v275_v2, 7  ;;  %v276_v6 = vld [vmem:[%s2008_s12 + $0x8] sm:$0xff] }
  0x5b   : > { %259 = vst [vmem:[#allocation2 + $0x8] sm:$0xff] %v1827_v0  ;;  %260 = vst [vmem:[#allocation2 + $0x10] sm:$0xff] %v1827_v0  ;;  %v280_v7 = vld [vmem:[%s2008_s12 + $0x28] sm:$0xff]  ;;  %v279_v8 = vld [vmem:[%s2008_s12 + $0x20] sm:$0xff]  ;;  %v295_v9 = vrot.slane %v278_v3, 7  ;;  %v293_v10 = vrot.slane %v276_v6, 7 }
  0x5c   : > { %261 = vst [vmem:[#allocation2 + $0x18] sm:$0xff] %v1827_v0  ;;  %264 = vst [vmem:[#allocation2 + $0x28] sm:$0xff] %v1827_v0  ;;  %308 = vrot.lane.b32.xlu1 %v294_v4, %s1828_s24  ;;  %304 = vrot.lane.b32.xlu0 %v292_v5, %s1828_s24  ;;  %v298_v11 = vrot.slane %v280_v7, 7  ;;  %v296_v12 = vrot.slane %v279_v8, 7  ;;  %vm291_vm1 = vcmask 1040384   ;;  %v282_v13 = vld [vmem:[%s2008_s12 + $0x38] sm:$0xff] }
  0x5d   : > { %269 = vst [vmem:[#allocation2 + $0x50] sm:$0x3] %v1827_v0  ;;  %270 = vst [vmem:[#allocation2 + $0x58] sm:$0x3] %v1827_v0  ;;  %v281_v14 = vld [vmem:[%s2008_s12 + $0x30] sm:$0xff]  ;;  %v302_v17 = vrot.slane %v282_v13, 7 }
  0x5e   : > { %271 = vst [vmem:[#allocation2 + $0x60] sm:$0x3] %v1827_v0  ;;  %272 = vst [vmem:[#allocation2 + $0x68] sm:$0x3] %v1827_v0  ;;  %v299_v15 = vsel %vm291_vm1, %v293_v10, %v298_v11  ;;  %v297_v16 = vsel %vm291_vm1, %v292_v5, %v296_v12  ;;  %v300_v18 = vrot.slane %v281_v14, 7  ;;  %vm273_vm2 = vcmask 517120  }
  0x5f   : > { %263 = vst.msk [vmem:[#allocation2 + $0x20] sm:$0xff] %vm262_vm0, %v1827_v0  ;;  %268 = vst.msk [vmem:[#allocation2 + $0x48] sm:$0xff] %vm262_vm0, %v1827_v0  ;;  %v303_v20 = vsel %vm291_vm1, %v295_v9, %v302_v17  ;;  %v376_v22 = vshrl.u32 %v375_v19, 7  ;;  %v444_v25 = vld [vmem:[#allocation6 + $0x1] ss:$4 sm:$0xf] }
  0x60   : > { %310 = vrot.lane.b32.xlu1 %v295_v9, %s1828_s24  ;;  %306 = vrot.lane.b32.xlu0 %v293_v10, %s1828_s24  ;;  %v301_v21 = vsel %vm291_vm1, %v294_v4, %v300_v18  ;;  %274 = vst.msk [vmem:[#allocation2 + $0x70] sm:$0x3] %vm273_vm2, %v1827_v0  ;;  %v544_v32 = vld [vmem:[#allocation6 + $0x2] ss:$4 sm:$0xf]  ;;  %s1829_s26 = smov 64  }
  0x61   : > { %v2038_v23 = vsub.s32 1, %v376_v22  ;;  %v2040_v24 = vsub.s32 0, %v376_v22  ;;  %v2046_v28 = vsub.s32 3, %v376_v22  ;;  %v2048_v29 = vsub.s32 2, %v376_v22  ;;  %s1830_s14 = smov 96   ;;  %s2694_s28 = scalar_lea.vmem [#allocation8], %s1591_s27 }
  0x62   : > { %v737_v37 = vld [vmem:[#allocation6 + $0x11] ss:$4 sm:$0xf]  ;;  %v871_v42 = vld [vmem:[#allocation6 + $0x12] ss:$4 sm:$0xf] }
  0x63   : > { %v453_v26 = vrot.slane %v444_v25, %v2038_v23  ;;  %v449_v27 = vrot.slane %v444_v25, %v2040_v24  ;;  %v461_v30 = vrot.slane %v444_v25, %v2046_v28  ;;  %v457_v31 = vrot.slane %v444_v25, %v2048_v29  ;;  %v1099_v47 = vld [vmem:[#allocation6 + $0x21] ss:$4 sm:$0xf]  ;;  %v1233_v52 = vld [vmem:[#allocation6 + $0x22] ss:$4 sm:$0xf] }
  0x64   : > { %314 = vrot.lane.b32.xlu1 %v299_v15, %s1828_s24  ;;  %312 = vrot.lane.b32.xlu0 %v297_v16, %s1828_s24  ;;  %v549_v33 = vrot.slane %v544_v32, %v2040_v24  ;;  %v553_v34 = vrot.slane %v544_v32, %v2038_v23  ;;  %v557_v35 = vrot.slane %v544_v32, %v2048_v29  ;;  %vm353_vm3 = vcmask 1047809   ;;  %v651_v0 = vld [vmem:[#allocation6 + $0x10] ss:$4 sm:$0xf]  ;;  %s1600_s16 = sshll.u32 %s1884_s22, 10  ;;  %s1496_s17 = sshll.u32 %s2694_s28, 4  ;;  %s2717_s17 = int_to_ptr.vmem [resolvable:$true] %s1496_s17 }
  0x65   : > { %v561_v36 = vrot.slane %v544_v32, %v2046_v28  ;;  %v742_v38 = vrot.slane %v737_v37, %v2040_v24  ;;  %v746_v39 = vrot.slane %v737_v37, %v2038_v23  ;;  %v750_v40 = vrot.slane %v737_v37, %v2048_v29  ;;  %v2099_v1 = vld [vmem:[#allocation6 + $0x20] ss:$4 sm:$0xf]  ;;  %s1483_s22 = scalar_lea.sflag [#allocation5], %s2002_s23  ;;  %s1831_s6 = smov [#allocation8]  }
  0x66   : > { %v754_v41 = vrot.slane %v737_v37, %v2046_v28  ;;  %v876_v43 = vrot.slane %v871_v42, %v2040_v24  ;;  %v880_v44 = vrot.slane %v871_v42, %v2038_v23  ;;  %v884_v45 = vrot.slane %v871_v42, %v2048_v29  ;;  %2787 = vst [vmem:[#allocation12_spill] sm:$0xff] %v2099_v1  ;;  %s1753_s7 = sshll.u32 %s1831_s6, 4  ;;  %s1754_s7 = int_to_ptr.vmem [resolvable:$false] %s1753_s7 }
  0x67   : > { %v888_v46 = vrot.slane %v871_v42, %v2046_v28  ;;  %v1104_v48 = vrot.slane %v1099_v47, %v2040_v24  ;;  %v1108_v49 = vrot.slane %v1099_v47, %v2038_v23  ;;  %v1112_v50 = vrot.slane %v1099_v47, %v2048_v29  ;;  %s1755_s15 = scalar_lea.vmem %s1754_s7, 2048  ;;  %p1756_p10 = scmp.lt.s32.totalorder %s2717_s17, %s1754_s7 }
  0x68   : > { %318 = vrot.lane.b32.xlu1 %v303_v20, %s1828_s24  ;;  %316 = vrot.lane.b32.xlu0 %v301_v21, %s1828_s24  ;;  %v1116_v51 = vrot.slane %v1099_v47, %v2046_v28  ;;  %v1238_v53 = vrot.slane %v1233_v52, %v2040_v24  ;;  %v1242_v54 = vrot.slane %v1233_v52, %v2038_v23  ;;  %vm328_vm4 = vcmask 261120  }
  0x69   : > { %v1246_v55 = vrot.slane %v1233_v52, %v2048_v29  ;;  %v1250_v56 = vrot.slane %v1233_v52, %v2046_v28  ;;  %vm358_vm5 = vcmask 261121   ;;  %vm360_vm6 = vcmask 1047808  }
  0x6a   : > { %v2105_v5 = vrot.slane %v651_v0, %v2038_v23  ;;  %v2108_v6 = vrot.slane %v651_v0, %v2040_v24  ;;  %v2112_v7 = vrot.slane %v2099_v1, %v2038_v23  ;;  %v2117_v9 = vrot.slane %v651_v0, %v2048_v29 }
  0x6b   : > { %vm366_vm7 = vcmask 1040640   ;;  %v2146_v21 = vrot.slane %v2099_v1, %v2048_v29  ;;  %vm371_vm8 = vcmask 253952   ;;  %vm697_vm9 = vcmask 1046528  }
  0x6c   : > { %322 = vrot.lane.b32.xlu1 %v298_v11, %s1828_s24  ;;  %320 = vrot.lane.b32.xlu0 %v296_v12, %s1828_s24  ;;  %v2121_v12 = vrot.slane %v2099_v1, %v2040_v24  ;;  %vm1059_vm10 = vcmask 1045504   ;;  %vm518_vm11 = vcmask 785408  }
  0x70   : > { %326 = vrot.lane.b32.xlu1 %v302_v17, %s1828_s24  ;;  %324 = vrot.lane.b32.xlu0 %v300_v18, %s1828_s24 }
  0x74   : > { %464 = vrot.lane.b32.xlu1 %v453_v26, %s1828_s24  ;;  %462 = vrot.lane.b32.xlu0 %v449_v27, %s1828_s24 }
  0x78   : > { %468 = vrot.lane.b32.xlu1 %v461_v30, %s1828_s24  ;;  %466 = vrot.lane.b32.xlu0 %v457_v31, %s1828_s24  ;;  %v2161_v31 = vrot.slane %v651_v0, %v2046_v28 }
  0x7c   : > { %562 = vrot.lane.b32.xlu1 %v549_v33, %s1829_s26  ;;  %564 = vrot.lane.b32.xlu0 %v553_v34, %s1829_s26 }
  0x80   : > { %566 = vrot.lane.b32.xlu1 %v557_v35, %s1829_s26  ;;  %568 = vrot.lane.b32.xlu0 %v561_v36, %s1829_s26 }
  0x84   : > { %755 = vrot.lane.b32.xlu1 %v742_v38, %s1828_s24  ;;  %757 = vrot.lane.b32.xlu0 %v746_v39, %s1828_s24 }
  0x88   : > { %759 = vrot.lane.b32.xlu1 %v750_v40, %s1828_s24  ;;  %761 = vrot.lane.b32.xlu0 %v754_v41, %s1828_s24 }
  0x8c   : > { %889 = vrot.lane.b32.xlu1 %v876_v43, %s1829_s26  ;;  %891 = vrot.lane.b32.xlu0 %v880_v44, %s1829_s26 }
  0x90   : > { %893 = vrot.lane.b32.xlu1 %v884_v45, %s1829_s26  ;;  %895 = vrot.lane.b32.xlu0 %v888_v46, %s1829_s26 }
  0x94   : > { %1117 = vrot.lane.b32.xlu1 %v1104_v48, %s1828_s24  ;;  %1119 = vrot.lane.b32.xlu0 %v1108_v49, %s1828_s24 }
  0x98   : > { %1121 = vrot.lane.b32.xlu1 %v1112_v50, %s1828_s24  ;;  %1123 = vrot.lane.b32.xlu0 %v1116_v51, %s1828_s24 }
  0x9c   : > { %1251 = vrot.lane.b32.xlu1 %v1238_v53, %s1829_s26  ;;  %1253 = vrot.lane.b32.xlu0 %v1242_v54, %s1829_s26 }
  0xa0   : > { %1255 = vrot.lane.b32.xlu1 %v1246_v55, %s1829_s26  ;;  %1257 = vrot.lane.b32.xlu0 %v1250_v56, %s1829_s26 }
  0xce   : > { %v309_v57 = vpop.permute.xlu1 %308  ;;  %v305_v58 = vpop.permute.xlu0 %304 }
  0xcf   : > { %354 = vst.msk [vmem:[#allocation2] sm:$0xfe] %vm353_vm3, %v305_v58 }
  0xd2   : > { %v311_v59 = vpop.permute.xlu1 %310  ;;  %v307_v60 = vpop.permute.xlu0 %306 }
  0xd3   : > { %v331_v61 = vsel %vm328_vm4, %v309_v57, %v311_v59  ;;  %359 = vst.msk [vmem:[#allocation2 + $0x20] sm:$0xfe] %vm358_vm5, %v311_v59  ;;  %v329_v62 = vsel %vm328_vm4, %v305_v58, %v307_v60  ;;  %v330_v63 = vsel %vm328_vm4, %v307_v60, %v309_v57 }
  0xd4   : > { %357 = vst [vmem:[#allocation2 + $0x18] sm:$0xfe] %v331_v61  ;;  %355 = vst [vmem:[#allocation2 + $0x8] sm:$0xfe] %v329_v62 }
  0xd5   : > { %356 = vst [vmem:[#allocation2 + $0x10] sm:$0xfe] %v330_v63 }
  0xd6   : > { %v315_v2 = vpop.permute.xlu1 %314  ;;  %v313_v3 = vpop.permute.xlu0 %312  ;;  %v2114_v8 = vld [vmem:[#allocation2] sm:$0xfe] }
  0xd7   : > { %v2102_v4 = vsel %vm328_vm4, %v313_v3, %v315_v2  ;;  %361 = vst.msk [vmem:[#allocation2 + $0x28] sm:$0xff] %vm360_vm6, %v313_v3  ;;  %v2130_v15 = vld [vmem:[#allocation2] sm:$0xfc]  ;;  %v673_v17 = vmul.f32 %v2108_v6, %v2114_v8 }
  0xd8   : > { %v2134_v16 = vmul.f32 %v2105_v5, %v2102_v4  ;;  %v2150_v22 = vmul.f32 %v2112_v7, %v2102_v4  ;;  %v1035_v35 = vmul.f32 %v2121_v12, %v2130_v15 }
  0xd9   : > { %v698_v43 = vrot.slane %v673_v17, 1 }
  0xda   : > { %v319_v10 = vpop.permute.xlu1 %318  ;;  %v317_v11 = vpop.permute.xlu0 %316  ;;  %v702_v40 = vrot.slane %v2134_v16, 1  ;;  %v2774_v44 = vrot.slane %v2150_v22, 2  ;;  %v1060_v53 = vrot.slane %v1035_v35, 2 }
  0xdb   : > { %365 = vst.msk [vmem:[#allocation2 + $0x48] sm:$0xff] %vm328_vm4, %v319_v10  ;;  %v2125_v13 = vsel %vm328_vm4, %v315_v2, %v317_v11  ;;  %v2128_v14 = vsel %vm328_vm4, %v317_v11, %v319_v10  ;;  %v2138_v18 = vld [vmem:[#allocation2 + $0x8] sm:$0xfe]  ;;  %v2167_v36 = vld [vmem:[#allocation2 + $0x18] sm:$0xfe]  ;;  %v2222_v11 = vld [vmem:[#allocation2] sm:$0xff] }
  0xdc   : > { %v2140_v19 = vld [vmem:[#allocation2 + $0x10] sm:$0xfe]  ;;  %v2142_v20 = vld [vmem:[#allocation2 + $0x8] sm:$0xfc]  ;;  %v674_v25 = vmul.f32 %v2105_v5, %v2138_v18  ;;  %v676_v47 = vmul.f32 %v2161_v31, %v2167_v36  ;;  %v2188_v48 = vmul.f32 %v2117_v9, %v2125_v13  ;;  %v2192_v51 = vmul.f32 %v2161_v31, %v2128_v14 }
  0xdd   : > { %v675_v26 = vmul.f32 %v2117_v9, %v2140_v19  ;;  %v1036_v27 = vmul.f32 %v2112_v7, %v2142_v20  ;;  %v2158_v30 = vld [vmem:[#allocation2 + $0x10] sm:$0xfc]  ;;  %v2212_v62 = vmul.f32 %v2146_v21, %v2125_v13  ;;  %v2224_v17 = vld [vmem:[#allocation2 + $0x8] sm:$0xff] }
  0xde   : > { %v323_v32 = vpop.permute.xlu1 %322  ;;  %v321_v33 = vpop.permute.xlu0 %320  ;;  %v2163_v34 = vld [vmem:[#allocation2 + $0x28] sm:$0xff]  ;;  %v701_v38 = vrot.slane %v674_v25, 1  ;;  %v1037_v42 = vmul.f32 %v2146_v21, %v2158_v30  ;;  %v705_v58 = vrot.slane %v2188_v48, 1  ;;  %v707_v59 = vrot.slane %v676_v47, 1 }
  0xdf   : > { %v335_v37 = vsel %vm328_vm4, %v321_v33, %v323_v32  ;;  %367 = vst.msk [vmem:[#allocation2 + $0x50] sm:$0x1] %vm366_vm7, %v321_v33  ;;  %v1063_v39 = vrot.slane %v1036_v27, 2  ;;  %v704_v41 = vrot.slane %v675_v26, 1  ;;  %v2177_v45 = vmul.f32 %v2108_v6, %v2163_v34 }
  0xe0   : > { %368 = vst [vmem:[#allocation2 + $0x58] sm:$0x1] %v335_v37  ;;  %v2182_v46 = vsel %vm697_vm9, %v701_v38, %v702_v40  ;;  %v2196_v52 = vmul.f32 %v2121_v12, %v2163_v34  ;;  %v2773_v60 = vrot.slane %v2192_v51, 1  ;;  %v1066_v63 = vrot.slane %v1037_v42, 2 }
  0xe1   : > { %2788 = vst [vmem:[#allocation13_spill] sm:$0xff] %v2182_v46  ;;  %v2201_v54 = vsel %vm1059_vm10, %v1063_v39, %v2774_v44  ;;  %v699_v57 = vrot.slane %v2177_v45, 1  ;;  %v2218_v2 = vsel %vm697_vm9, %v704_v41, %v705_v58 }
  0xe2   : > { %v327_v49 = vpop.permute.xlu1 %326  ;;  %v325_v50 = vpop.permute.xlu0 %324  ;;  %2789 = vst [vmem:[#allocation14_spill] sm:$0xff] %v2201_v54  ;;  %v1061_v61 = vrot.slane %v2196_v52, 2  ;;  %2790 = vst [vmem:[#allocation15_spill] sm:$0xff] %v2218_v2  ;;  %v2231_v26 = vsel %vm697_vm9, %v707_v59, %v2773_v60  ;;  %v2260_v52 = vld [vmem:[#allocation2 + $0x18] sm:$0xff] }
  0xe3   : > { %372 = vst.msk [vmem:[#allocation2 + $0x70] sm:$0x1] %vm371_vm8, %v327_v49  ;;  %v336_v55 = vsel %vm328_vm4, %v323_v32, %v325_v50  ;;  %v337_v56 = vsel %vm328_vm4, %v325_v50, %v327_v49  ;;  %v2215_v0 = vsel %vm697_vm9, %v698_v43, %v699_v57  ;;  %2791 = vst [vmem:[#allocation16_spill] sm:$0xff] %v2231_v26  ;;  %v1067_v32 = vrot.slane %v2212_v62, 2  ;;  %v441_v49 = vld [vmem:[#allocation2 + $0x20] sm:$0xff] }
  0xe4   : > { %369 = vst [vmem:[#allocation2 + $0x60] sm:$0x1] %v336_v55  ;;  %370 = vst [vmem:[#allocation2 + $0x68] sm:$0x1] %v337_v56  ;;  %v2234_v27 = vsel %vm1059_vm10, %v1060_v53, %v1061_v61 }
  0xe5   : > { %2792 = vst [vmem:[#allocation17_spill] sm:$0xff] %v2234_v27 }
  0xe6   : > { %v2220_v3 = vpop.permute.xlu1 %464  ;;  %v463_v10 = vpop.permute.xlu0 %462  ;;  %v2226_v25 = vld [vmem:[#allocation2 + $0x50] sm:$0x1] }
  0xe7   : > { %v2239_v33 = vsel %vm328_vm4, %v463_v10, %v2220_v3  ;;  %v478_v35 = vmul.f32 %v463_v10, %v2222_v11  ;;  %v681_v37 = vmul.f32 %v2108_v6, %v2226_v25  ;;  %v2244_v38 = vld [vmem:[#allocation2 + $0x58] sm:$0x1]  ;;  %v2246_v39 = vld [vmem:[#allocation2 + $0x50] sm:$0x3]  ;;  %v2258_v6 = vsel %vm1059_vm10, %v1066_v63, %v1067_v32 }
  0xe8   : > { %v2248_v41 = vld [vmem:[#allocation2 + $0x58] sm:$0x3]  ;;  %v479_v42 = vmul.f32 %v2239_v33, %v2224_v17  ;;  %v682_v43 = vmul.f32 %v2105_v5, %v2244_v38  ;;  %2793 = vst [vmem:[#allocation18_spill] sm:$0xff] %v2258_v6  ;;  %v1043_v5 = vmul.f32 %v2121_v12, %v2246_v39 }
  0xe9   : > { %498 = vrot.lane.b32.xlu0 %v478_v35, %s1830_s14  ;;  %v1044_v45 = vmul.f32 %v2112_v7, %v2248_v41  ;;  %v710_v47 = vrot.slane %v681_v37, 1 }
  0xea   : > { %v469_v48 = vpop.permute.xlu1 %468  ;;  %v467_v50 = vpop.permute.xlu0 %466  ;;  %500 = vrot.lane.b32.xlu1 %v479_v42, %s1830_s14  ;;  %v712_v53 = vrot.slane %v682_v43, 1 }
  0xeb   : > { %v482_v55 = vmul.f32 %v469_v48, %v441_v49  ;;  %v2266_v56 = vsel %vm328_vm4, %v467_v50, %v469_v48  ;;  %v2268_v7 = vld [vmem:[#allocation2 + $0x60] sm:$0x1]  ;;  %v2272_v62 = vld [vmem:[#allocation2 + $0x68] sm:$0x1]  ;;  %v1074_v37 = vrot.slane %v1044_v45, 2  ;;  %v2282_v42 = vsel %vm697_vm9, %v699_v57, %v710_v47 }
  0xec   : > { %v2270_v59 = vld [vmem:[#allocation2 + $0x60] sm:$0x3]  ;;  %v481_v63 = vmul.f32 %v2266_v56, %v2260_v52  ;;  %v683_v35 = vmul.f32 %v2117_v9, %v2268_v7  ;;  %2794 = vst [vmem:[#allocation19_spill] sm:$0xff] %v2282_v42  ;;  %v2288_v44 = vsel %vm697_vm9, %v702_v40, %v712_v53  ;;  %v1072_v9 = vrot.slane %v1043_v5, 2 }
  0xed   : > { %506 = vrot.lane.b32.xlu0 %v482_v55, %s1830_s14  ;;  %v1045_v12 = vmul.f32 %v2146_v21, %v2270_v59  ;;  %2795 = vst [vmem:[#allocation20_spill] sm:$0xff] %v2288_v44  ;;  %v684_v55 = vmul.f32 %v2161_v31, %v2272_v62  ;;  %v483_v21 = vmul.f32 %v463_v10, %v2163_v34  ;;  %v2798_v40 = vrot.slane %v2150_v22, 2 }
  0xee   : > { %v563_v43 = vpop.permute.xlu1 %562  ;;  %v565_v60 = vpop.permute.xlu0 %564  ;;  %504 = vrot.lane.b32.xlu1 %v481_v63, %s1830_s14  ;;  %v714_v6 = vrot.slane %v683_v35, 1  ;;  %v2299_v16 = vsel %vm1059_vm10, %v1061_v61, %v1072_v9  ;;  %v2800_v10 = vrot.slane %v2192_v51, 1 }
  0xef   : > { %v578_v45 = vmul.f32 %v563_v43, %v2222_v11  ;;  %v1076_v57 = vrot.slane %v1045_v12, 2  ;;  %v716_v47 = vrot.slane %v684_v55, 1  ;;  %2797 = vst [vmem:[#allocation22_spill] sm:$0xff] %v2299_v16  ;;  %v2304_v31 = vsel %vm1059_vm10, %v2798_v40, %v1074_v37  ;;  %v2322_v55 = vld [vmem:[#allocation2 + $0x10] sm:$0xff] }
  0xf0   : > { %v2296_v63 = vsel %vm697_vm9, %v705_v58, %v714_v6  ;;  %2799 = vst [vmem:[#allocation23_spill] sm:$0xff] %v2304_v31  ;;  %v2315_v6 = vld [vmem:[#allocation2 + $0x48] sm:$0xff]  ;;  %v471_v37 = vsel %vm328_vm4, %v2220_v3, %v467_v50  ;;  %v570_v12 = vsel %vm262_vm0, %v563_v43, %v565_v60 }
  0xf1   : > { %598 = vrot.lane.b32.xlu0 %v578_v45, %s1829_s26  ;;  %2796 = vst [vmem:[#allocation21_spill] sm:$0xff] %v2296_v63  ;;  %v2310_v35 = vsel %vm697_vm9, %v2800_v10, %v716_v47  ;;  %v2313_v58 = vsel %vm1059_vm10, %v1067_v32, %v1076_v57  ;;  %v487_v22 = vmul.f32 %v469_v48, %v2315_v6 }
  0xf2   : > { %v567_v53 = vpop.permute.xlu1 %566  ;;  %v569_v5 = vpop.permute.xlu0 %568  ;;  %508 = vrot.lane.b32.xlu1 %v483_v21, %s1830_s14  ;;  %2801 = vst [vmem:[#allocation24_spill] sm:$0xff] %v2310_v35  ;;  %2802 = vst [vmem:[#allocation25_spill] sm:$0xff] %v2313_v58  ;;  %v480_v32 = vmul.f32 %v471_v37, %v2322_v55 }
  0xf3   : > { %v582_v61 = vmul.f32 %v569_v5, %v441_v49  ;;  %v579_v49 = vmul.f32 %v570_v12, %v2224_v17  ;;  %v571_v48 = vsel %vm262_vm0, %v565_v60, %v567_v53  ;;  %v572_v50 = vsel %vm262_vm0, %v567_v53, %v569_v5 }
  0xf4   : > { %v580_v40 = vmul.f32 %v571_v48, %v2322_v55 }
  0xf5   : > { %606 = vrot.lane.b32.xlu0 %v582_v61, %s1829_s26  ;;  %v581_v61 = vmul.f32 %v572_v50, %v2260_v52 }
  0xf6   : > { %v756_v51 = vpop.permute.xlu1 %755  ;;  %v758_v9 = vpop.permute.xlu0 %757  ;;  %516 = vrot.lane.b32.xlu1 %v487_v22, %s1830_s14 }
  0xf7   : > { %v763_v45 = vsel %vm328_vm4, %v756_v51, %v758_v9 }
  0xf8   : > { %v777_v3 = vmul.f32 %v763_v45, %v2102_v4  ;;  %v772_v21 = vmul.f32 %v763_v45, %v2138_v18  ;;  %v782_v16 = vmul.f32 %v763_v45, %v2244_v38 }
  0xf9   : > { %502 = vrot.lane.b32.xlu0 %v480_v32, %s1830_s14 }
  0xfa   : > { %v2333_v57 = vpop.permute.xlu1 %759  ;;  %v2335_v47 = vpop.permute.xlu0 %761  ;;  %600 = vrot.lane.b32.xlu1 %v579_v49, %s1829_s26  ;;  %v804_v53 = vrot.slane %v772_v21, 1  ;;  %v805_v22 = vrot.slane %v777_v3, 1  ;;  %v484_v49 = vmul.f32 %v2239_v33, %v2102_v4  ;;  %v486_v33 = vmul.f32 %v2266_v56, %v2128_v14 }
  0xfb   : > { %v764_v10 = vsel %vm328_vm4, %v758_v9, %v2333_v57  ;;  %v583_v9 = vmul.f32 %v563_v43, %v2163_v34  ;;  %v587_v43 = vmul.f32 %v569_v5, %v2315_v6  ;;  %v818_v45 = vrot.slane %v782_v16, 1 }
  0xfc   : > { %v778_v60 = vmul.f32 %v764_v10, %v2125_v13  ;;  %v773_v32 = vmul.f32 %v764_v10, %v2140_v19  ;;  %v783_v54 = vmul.f32 %v764_v10, %v2268_v7  ;;  %v485_v56 = vmul.f32 %v471_v37, %v2125_v13 }
  0xfd   : > { %602 = vrot.lane.b32.xlu0 %v580_v40, %s1829_s26  ;;  %v771_v16 = vmul.f32 %v756_v51, %v2114_v8  ;;  %v780_v1 = vmul.f32 %v2335_v47, %v2315_v6 }
  0xfe   : > { %v2345_v58 = vpop.permute.xlu1 %889  ;;  %v2347_v31 = vpop.permute.xlu0 %891  ;;  %604 = vrot.lane.b32.xlu1 %v581_v61, %s1829_s26  ;;  %v807_v3 = vrot.slane %v773_v32, 1  ;;  %v808_v21 = vrot.slane %v778_v60, 1  ;;  %v2362_v61 = vsel %vm697_vm9, %v804_v53, %v805_v22  ;;  %v820_v10 = vrot.slane %v783_v54, 1 }
  0xff   : > { %v584_v53 = vmul.f32 %v570_v12, %v2102_v4  ;;  %v776_v54 = vmul.f32 %v756_v51, %v2163_v34 }
 0x100   : > { %v2389_v12 = vsel %vm697_vm9, %v808_v21, %v820_v10  ;;  %v801_v10 = vrot.slane %v771_v16, 1 }
 0x101   : > { %510 = vrot.lane.b32.xlu0 %v484_v49, %s1830_s14  ;;  %v2372_v49 = vsel %vm697_vm9, %v807_v3, %v808_v21  ;;  %v2386_v3 = vsel %vm697_vm9, %v805_v22, %v818_v45  ;;  %v585_v22 = vmul.f32 %v571_v48, %v2125_v13  ;;  %v2401_v45 = vld [vmem:[#allocation2 + $0x70] sm:$0x1]  ;;  %v802_v44 = vrot.slane %v776_v54, 1 }
 0x102   : > { %v2356_v40 = vpop.permute.xlu1 %893  ;;  %v2358_v27 = vpop.permute.xlu0 %895  ;;  %608 = vrot.lane.b32.xlu1 %v583_v9, %s1829_s26  ;;  %v785_v35 = vmul.f32 %v2335_v47, %v2401_v45  ;;  %v910_v48 = vmul.f32 %v2345_v58, %v2163_v34 }
 0x103   : > { %v803_v54 = vsel %vm697_vm9, %v801_v10, %v802_v44  ;;  %v2425_v10 = vmul.f32 %v2358_v27, %v2315_v6 }
 0x104   : > { %v936_v46 = vrot.slane %v910_v48, 1 }
 0x105   : > { %514 = vrot.lane.b32.xlu0 %v486_v33, %s1830_s14  ;;  %v781_v33 = vmul.f32 %v756_v51, %v2226_v25 }
 0x106   : > { %v2368_v32 = vpop.permute.xlu1 %1117  ;;  %v1120_v60 = vpop.permute.xlu0 %1119  ;;  %616 = vrot.lane.b32.xlu1 %v587_v43, %s1829_s26  ;;  %v734_v43 = vld [vmem:[#allocation2 + $0x20] sm:$0xfe] }
 0x107   : > { %v1125_v9 = vsel %vm328_vm4, %v2368_v32, %v1120_v60  ;;  %v775_v37 = vmul.f32 %v2335_v47, %v734_v43  ;;  %v816_v42 = vrot.slane %v781_v33, 1  ;;  %v824_v33 = vrot.slane %v785_v35, 1 }
 0x108   : > { %v2381_v5 = vmul.f32 %v1125_v9, %v2102_v4  ;;  %v1134_v26 = vmul.f32 %v1125_v9, %v2142_v20  ;;  %v909_v2 = vmul.f32 %v2358_v27, %v734_v43  ;;  %v765_v43 = vsel %vm328_vm4, %v2333_v57, %v2335_v47 }
 0x109   : > { %610 = vrot.lane.b32.xlu0 %v584_v53, %s1829_s26  ;;  %v586_v53 = vmul.f32 %v572_v50, %v2128_v14  ;;  %v813_v50 = vrot.slane %v775_v37, 1  ;;  %v1144_v37 = vmul.f32 %v1125_v9, %v2248_v41  ;;  %v774_v57 = vmul.f32 %v765_v43, %v2167_v36 }
 0x10a   : > { %v2394_v63 = vpop.permute.xlu1 %1121  ;;  %512 = vrot.lane.b32.xlu1 %v485_v56, %s1830_s14  ;;  %v905_v56 = vmul.f32 %v2345_v58, %v2114_v8  ;;  %v817_v8 = vsel %vm697_vm9, %v802_v44, %v816_v42  ;;  %v1167_v44 = vrot.slane %v2381_v5, 2  ;;  %v948_v5 = vrot.slane %v2425_v10, 1 }
 0x10b   : > { %v1126_v51 = vsel %vm328_vm4, %v1120_v60, %v2394_v63  ;;  %v814_v60 = vrot.slane %v780_v1, 1  ;;  %v779_v47 = vmul.f32 %v765_v43, %v2128_v14 }
 0x10c   : > { %v1140_v21 = vmul.f32 %v1126_v51, %v2125_v13  ;;  %v1135_v16 = vmul.f32 %v1126_v51, %v2158_v30 }
 0x10d   : > { %614 = vrot.lane.b32.xlu0 %v586_v53, %s1829_s26  ;;  %v915_v53 = vmul.f32 %v2345_v58, %v2226_v25  ;;  %v815_v1 = vsel %vm697_vm9, %v813_v50, %v814_v60  ;;  %v1145_v25 = vmul.f32 %v1126_v51, %v2270_v59  ;;  %v825_v9 = vsel %vm697_vm9, %v814_v60, %v824_v33 }
 0x10e   : > { %612 = vrot.lane.b32.xlu1 %v585_v22, %s1829_s26  ;;  %v935_v22 = vrot.slane %v905_v56, 1  ;;  %v1169_v42 = vrot.slane %v1135_v16, 2  ;;  %v1170_v35 = vrot.slane %v1140_v21, 2  ;;  %v1180_v56 = vrot.slane %v1144_v37, 2 }
 0x10f   : > { %v950_v50 = vrot.slane %v915_v53, 1  ;;  %v810_v33 = vrot.slane %v774_v57, 1  ;;  %v897_v37 = vsel %vm262_vm0, %v2345_v58, %v2347_v31  ;;  %v899_v58 = vsel %vm262_vm0, %v2356_v40, %v2358_v27  ;;  %v1124_v57 = vpop.permute.xlu0 %1123 }
 0x110   : > { %v937_v51 = vsel %vm697_vm9, %v935_v22, %v936_v46  ;;  %v2441_v48 = vsel %vm1059_vm10, %v1169_v42, %v1170_v35  ;;  %v906_v22 = vmul.f32 %v897_v37, %v2138_v18 }
 0x111   : > { %826 = vrot.lane.b32.xlu0 %v803_v54, %s1830_s14  ;;  %v1166_v54 = vrot.slane %v1134_v26, 2  ;;  %v947_v26 = vrot.slane %v909_v2, 1  ;;  %v951_v60 = vsel %vm697_vm9, %v936_v46, %v950_v50  ;;  %v2449_v2 = vsel %vm1059_vm10, %v1167_v44, %v1180_v56 }
 0x112   : > { %836 = vrot.lane.b32.xlu1 %v817_v8, %s1830_s14  ;;  %v1182_v8 = vrot.slane %v1145_v25, 2  ;;  %v811_v46 = vrot.slane %v779_v47, 1  ;;  %v911_v25 = vmul.f32 %v897_v37, %v2102_v4  ;;  %v1133_v47 = vmul.f32 %v2368_v32, %v2130_v15 }
 0x113   : > { %v2438_v21 = vsel %vm1059_vm10, %v1166_v54, %v1167_v44  ;;  %v949_v53 = vsel %vm697_vm9, %v947_v26, %v948_v5  ;;  %v898_v54 = vsel %vm262_vm0, %v2347_v31, %v2356_v40  ;;  %v908_v31 = vmul.f32 %v899_v58, %v2167_v36 }
 0x114   : > { %v2452_v16 = vsel %vm1059_vm10, %v1170_v35, %v1182_v8  ;;  %v812_v44 = vsel %vm697_vm9, %v810_v33, %v811_v46  ;;  %v912_v18 = vmul.f32 %v898_v54, %v2125_v13  ;;  %v938_v35 = vrot.slane %v906_v22, 1 }
 0x115   : > { %834 = vrot.lane.b32.xlu0 %v815_v1, %s1830_s14  ;;  %v784_v1 = vmul.f32 %v765_v43, %v2272_v62  ;;  %v916_v40 = vmul.f32 %v897_v37, %v2244_v38  ;;  %v917_v56 = vmul.f32 %v898_v54, %v2268_v7 }
 0x116   : > { %844 = vrot.lane.b32.xlu1 %v825_v9, %s1830_s14  ;;  %v939_v9 = vrot.slane %v911_v25, 1  ;;  %v942_v43 = vrot.slane %v912_v18, 1  ;;  %v2508_v25 = vld [vmem:[#allocation2 + $0x18] sm:$0xfc]  ;;  %v1142_v18 = vmul.f32 %v1124_v57, %v2315_v6 }
 0x117   : > { %v822_v42 = vrot.slane %v784_v1, 1  ;;  %v952_v36 = vrot.slane %v916_v40, 1  ;;  %v954_v38 = vrot.slane %v917_v56, 1  ;;  %v1163_v1 = vrot.slane %v1133_v47, 2  ;;  %v1254_v40 = vpop.permute.xlu0 %1253 }
 0x118   : > { %v940_v8 = vsel %vm697_vm9, %v938_v35, %v939_v9  ;;  %v1143_v35 = vmul.f32 %v2368_v32, %v2246_v39 }
 0x119   : > { %960 = vrot.lane.b32.xlu0 %v937_v51, %s1829_s26  ;;  %v953_v33 = vsel %vm697_vm9, %v939_v9, %v952_v36 }
 0x11a   : > { %970 = vrot.lane.b32.xlu1 %v951_v60, %s1829_s26  ;;  %v919_v60 = vmul.f32 %v2358_v27, %v2401_v45  ;;  %v955_v27 = vsel %vm697_vm9, %v942_v43, %v954_v38 }
 0x11c   : > { %v958_v45 = vrot.slane %v919_v60, 1 }
 0x11d   : > { %968 = vrot.lane.b32.xlu0 %v949_v53, %s1829_s26  ;;  %v1138_v53 = vmul.f32 %v2368_v32, %v2163_v34  ;;  %v2528_v32 = vld [vmem:[#allocation2 + $0x68] sm:$0x3] }
 0x11e   : > { %828 = vrot.lane.b32.xlu1 %v2362_v61, %s1830_s14  ;;  %v907_v61 = vmul.f32 %v898_v54, %v2140_v19  ;;  %v823_v19 = vsel %vm697_vm9, %v811_v46, %v822_v42  ;;  %v1127_v46 = vsel %vm328_vm4, %v2394_v63, %v1124_v57  ;;  %v959_v54 = vsel %vm697_vm9, %v948_v5, %v958_v45  ;;  %v1096_v63 = vld [vmem:[#allocation2 + $0x20] sm:$0xfc]  ;;  %v1252_v5 = vpop.permute.xlu1 %1251 }
 0x11f   : > { %v1164_v22 = vrot.slane %v1138_v53, 2  ;;  %v1259_v56 = vsel %vm262_vm0, %v1252_v5, %v1254_v40  ;;  %v1272_v38 = vmul.f32 %v1252_v5, %v2163_v34 }
 0x120   : > { %v941_v50 = vrot.slane %v907_v61, 1  ;;  %v1137_v61 = vmul.f32 %v1124_v57, %v1096_v63  ;;  %v1268_v36 = vmul.f32 %v1259_v56, %v2142_v20  ;;  %v1273_v47 = vmul.f32 %v1259_v56, %v2102_v4 }
 0x121   : > { %830 = vrot.lane.b32.xlu0 %v2372_v49, %s1830_s14  ;;  %v913_v49 = vmul.f32 %v899_v58, %v2128_v14  ;;  %v1165_v42 = vsel %vm1059_vm10, %v1163_v1, %v1164_v22  ;;  %v1298_v45 = vrot.slane %v1272_v38, 2 }
 0x122   : > { %832 = vrot.lane.b32.xlu1 %v812_v44, %s1830_s14  ;;  %v943_v26 = vsel %vm697_vm9, %v941_v50, %v942_v43  ;;  %v1136_v44 = vmul.f32 %v1127_v46, %v2508_v25  ;;  %v1178_v43 = vrot.slane %v1143_v35, 2  ;;  %v1300_v20 = vrot.slane %v1268_v36, 2 }
 0x123   : > { %v945_v51 = vrot.slane %v913_v49, 1  ;;  %v1176_v49 = vrot.slane %v1142_v18, 2  ;;  %v1278_v35 = vmul.f32 %v1259_v56, %v2248_v41  ;;  %v373_v41 = vld [vmem:[%s2766_s2] sm:$0xf] }
 0x124   : > { %v1172_v10 = vrot.slane %v1136_v44, 2 }
 0x125   : > { %838 = vrot.lane.b32.xlu0 %v2386_v3, %s1830_s14  ;;  %v944_v3 = vrot.slane %v908_v31, 1  ;;  %v1175_v31 = vrot.slane %v1137_v61, 2 }
 0x126   : > { %840 = vrot.lane.b32.xlu1 %v2389_v12, %s1830_s14  ;;  %v918_v12 = vmul.f32 %v899_v58, %v2272_v62  ;;  %v1141_v58 = vmul.f32 %v1127_v46, %v2128_v14 }
 0x127   : > { %v946_v7 = vsel %vm697_vm9, %v944_v3, %v945_v51 }
 0x128   : > { %v956_v62 = vrot.slane %v918_v12, 1  ;;  %v1173_v9 = vrot.slane %v1141_v58, 2  ;;  %v1267_v12 = vmul.f32 %v1252_v5, %v2130_v15  ;;  %v1277_v58 = vmul.f32 %v1252_v5, %v2246_v39 }
 0x129   : > { %842 = vrot.lane.b32.xlu0 %v823_v19, %s1830_s14  ;;  %v1097_v19 = vld [vmem:[#allocation2 + $0x70] sm:$0x3] }
 0x12a   : > { %962 = vrot.lane.b32.xlu1 %v940_v8, %s1829_s26  ;;  %v957_v37 = vsel %vm697_vm9, %v945_v51, %v956_v62  ;;  %v1174_v50 = vsel %vm1059_vm10, %v1172_v10, %v1173_v9  ;;  %v1177_v8 = vsel %vm1059_vm10, %v1175_v31, %v1176_v49  ;;  %v1147_v3 = vmul.f32 %v1124_v57, %v1097_v19  ;;  %v1256_v51 = vpop.permute.xlu1 %1255  ;;  %v403_v31 = vld [vmem:[#allocation6] ss:$4 sm:$0xf] }
 0x12b   : > { %v1260_v60 = vsel %vm262_vm0, %v1254_v40, %v1256_v51  ;;  %v1312_v5 = vrot.slane %v1277_v58, 2  ;;  %v2579_v36 = vrot.slane %v403_v31, %v2046_v28 }
 0x12c   : > { %v1186_v57 = vrot.slane %v1147_v3, 2  ;;  %v1274_v15 = vmul.f32 %v1260_v60, %v2125_v13 }
 0x12d   : > { %964 = vrot.lane.b32.xlu0 %v943_v26, %s1829_s26  ;;  %v1258_v26 = vpop.permute.xlu0 %1257 }
 0x12e   : > { %966 = vrot.lane.b32.xlu1 %v946_v7, %s1829_s26  ;;  %v1261_v53 = vsel %vm262_vm0, %v1256_v51, %v1258_v26  ;;  %v1281_v56 = vmul.f32 %v1258_v26, %v1097_v19 }
 0x12f   : > { %v1275_v1 = vmul.f32 %v1261_v53, %v2128_v14 }
 0x131   : > { %972 = vrot.lane.b32.xlu0 %v953_v33, %s1829_s26  ;;  %v1269_v33 = vmul.f32 %v1260_v60, %v2158_v30  ;;  %v1304_v30 = vrot.slane %v1274_v15, 2 }
 0x132   : > { %974 = vrot.lane.b32.xlu1 %v955_v27, %s1829_s26  ;;  %v1297_v27 = vrot.slane %v1267_v12, 2 }
 0x134   : > { %v1299_v44 = vsel %vm1059_vm10, %v1297_v27, %v1298_v45 }
 0x135   : > { %976 = vrot.lane.b32.xlu0 %v957_v37, %s1829_s26  ;;  %v1270_v37 = vmul.f32 %v1261_v53, %v2508_v25 }
 0x136   : > { %978 = vrot.lane.b32.xlu1 %v959_v54, %s1829_s26  ;;  %v1276_v54 = vmul.f32 %v1258_v26, %v2315_v6  ;;  %v1279_v6 = vmul.f32 %v1260_v60, %v2270_v59 }
 0x137   : > { %v1306_v18 = vrot.slane %v1270_v37, 2 }
 0x138   : > { %v1316_v59 = vrot.slane %v1279_v6, 2 }
 0x139   : > { %1188 = vrot.lane.b32.xlu0 %v1165_v42, %s1830_s14  ;;  %v1307_v42 = vrot.slane %v1275_v1, 2 }
 0x13a   : > { %1190 = vrot.lane.b32.xlu1 %v2438_v21, %s1830_s14  ;;  %v1146_v21 = vmul.f32 %v1127_v46, %v2528_v32  ;;  %v1301_v46 = vrot.slane %v1273_v47, 2  ;;  %v1317_v19 = vsel %vm1059_vm10, %v1304_v30, %v1316_v59  ;;  %v390_v47 = vrot.slane %v373_v41, %v2046_v28 }
 0x13b   : > { %v1308_v39 = vsel %vm1059_vm10, %v1306_v18, %v1307_v42 }
 0x13c   : > { %v1184_v7 = vrot.slane %v1146_v21, 2  ;;  %v1302_v61 = vsel %vm1059_vm10, %v1300_v20, %v1301_v46  ;;  %v378_v21 = vrot.slane %v373_v41, %v2040_v24 }
 0x13d   : > { %1192 = vrot.lane.b32.xlu0 %v2441_v48, %s1830_s14  ;;  %v1179_v48 = vsel %vm1059_vm10, %v1164_v22, %v1178_v43  ;;  %v1303_v22 = vrot.slane %v1269_v33, 2  ;;  %v1280_v43 = vmul.f32 %v1261_v53, %v2528_v32 }
 0x13e   : > { %1194 = vrot.lane.b32.xlu1 %v1174_v50, %s1830_s14  ;;  %v1185_v62 = vsel %vm1059_vm10, %v1173_v9, %v1184_v7  ;;  %v1310_v9 = vrot.slane %v1276_v54, 2  ;;  %v408_v50 = vrot.slane %v403_v31, %v2040_v24 }
 0x140   : > { %v425_v51 = vmul.f32 %v408_v50, %v2222_v11  ;;  %v428_v11 = vmul.f32 %v2579_v36, %v2260_v52  ;;  %v412_v52 = vrot.slane %v403_v31, %v2038_v23 }
 0x141   : > { %1196 = vrot.lane.b32.xlu0 %v1177_v8, %s1830_s14  ;;  %v1313_v8 = vsel %vm1059_vm10, %v1298_v45, %v1312_v5 }
 0x142   : > { %1198 = vrot.lane.b32.xlu1 %v1179_v48, %s1830_s14  ;;  %v1318_v48 = vrot.slane %v1280_v43, 2  ;;  %v433_v60 = vadd.f32 %v425_v51, %v378_v21  ;;  %v436_v15 = vadd.f32 %v428_v11, %v390_v47  ;;  %v2803_v51 = vld [vmem:[#allocation13_spill] sm:$0xff] }
 0x144   : > { %v1319_v7 = vsel %vm1059_vm10, %v1307_v42, %v1318_v48 }
 0x145   : > { %1200 = vrot.lane.b32.xlu0 %v2449_v2, %s1830_s14  ;;  %v1187_v2 = vsel %vm1059_vm10, %v1176_v49, %v1186_v57  ;;  %v1314_v49 = vrot.slane %v1278_v35, 2 }
 0x146   : > { %1202 = vrot.lane.b32.xlu1 %v2452_v16, %s1830_s14  ;;  %v1271_v16 = vmul.f32 %v1258_v26, %v1096_v63  ;;  %v1305_v63 = vsel %vm1059_vm10, %v1303_v22, %v1304_v30  ;;  %v1320_v26 = vrot.slane %v1281_v56, 2  ;;  %v426_v22 = vmul.f32 %v412_v52, %v2224_v17 }
 0x147   : > { %v1315_v3 = vsel %vm1059_vm10, %v1301_v46, %v1314_v49  ;;  %v429_v17 = vmul.f32 %v408_v50, %v2163_v34  ;;  %v2804_v50 = vld [vmem:[#allocation15_spill] sm:$0xff] }
 0x148   : > { %v1309_v10 = vrot.slane %v1271_v16, 2  ;;  %v1321_v53 = vsel %vm1059_vm10, %v1310_v9, %v1320_v26  ;;  %v386_v16 = vrot.slane %v373_v41, %v2048_v29 }
 0x149   : > { %1204 = vrot.lane.b32.xlu0 %v1185_v62, %s1830_s14 }
 0x14a   : > { %1206 = vrot.lane.b32.xlu1 %v1187_v2, %s1830_s14  ;;  %v1311_v40 = vsel %vm1059_vm10, %v1309_v10, %v1310_v9  ;;  %v416_v2 = vrot.slane %v403_v31, %v2048_v29  ;;  %s1749_s14 = scalar_lea.vmem %s2717_s17, 1024 }
 0x14b   : > { %p1750_p4 = scmp.ne.s32.totalorder %s2717_s17, %s1749_s14  ;;  %p1757_p13 = scmp.lt.s32.totalorder %s1755_s15, %s1749_s14 }
 0x14c   : > { %v427_v30 = vmul.f32 %v416_v2, %v2322_v55 }
 0x14d   : > { %1322 = vrot.lane.b32.xlu0 %v1299_v44, %s1829_s26  ;;  %v382_v44 = vrot.slane %v373_v41, %v2038_v23  ;;  %p1751_p6 = pnand %p1750_p4, %p1954_p12  ;;  %p1758_p3 = por %p1757_p13, %p1756_p10 }
 0x14e   : > { %1324 = vrot.lane.b32.xlu1 %v1302_v61, %s1829_s26  ;;  %v435_v61 = vadd.f32 %v427_v30, %v386_v16 }
 0x14f   : > { %v434_v58 = vadd.f32 %v426_v22, %v382_v44  ;;  %p1752_p8 = pneg %p1751_p6 }
 0x151   : > { %1326 = vrot.lane.b32.xlu0 %v1305_v63, %s1829_s26  ;;  %p1759_p7 = pnand %p1758_p3, %p1752_p8 }
 0x152   : > { %1328 = vrot.lane.b32.xlu1 %v1308_v39, %s1829_s26 }
 0x155   : > { %1330 = vrot.lane.b32.xlu0 %v1311_v40, %s1829_s26 }
 0x156   : > { %1332 = vrot.lane.b32.xlu1 %v1313_v8, %s1829_s26  ;;  %v437_v8 = vadd.f32 %v429_v17, %v378_v21  ;;  %v431_v21 = vmul.f32 %v416_v2, %v2125_v13  ;;  %v2806_v13 = vld [vmem:[#allocation19_spill] sm:$0xff] }
 0x159   : > { %1334 = vrot.lane.b32.xlu0 %v1315_v3, %s1829_s26 }
 0x15a   : > { %1336 = vrot.lane.b32.xlu1 %v1317_v19, %s1829_s26 }
 0x15b   : > { %v499_v12 = vpop.permute.xlu0 %498 }
 0x15c   : > { %v501_v38 = vpop.permute.xlu1 %500 }
 0x15d   : > { %v519_v57 = vsel %vm518_vm11, %v499_v12, %v501_v38  ;;  %1338 = vrot.lane.b32.xlu0 %v1319_v7, %s1829_s26  ;;  %v2805_v12 = vld [vmem:[#allocation16_spill] sm:$0xff] }
 0x15e   : > { %v535_v20 = vadd.f32 %v519_v57, %v433_v60  ;;  %1340 = vrot.lane.b32.xlu1 %v1321_v53, %s1829_s26  ;;  %v430_v57 = vmul.f32 %v412_v52, %v2102_v4  ;;  %v432_v53 = vmul.f32 %v2579_v36, %v2128_v14  ;;  %s2714_s26 = scalar_lea.hbm %s2769_s5, %s1600_s16 }
 0x15f   : > { %v507_v33 = vpop.permute.xlu0 %506 }
 0x160   : > { %v505_v62 = vpop.permute.xlu1 %504 }
 0x161   : > { %v522_v27 = vsel %vm518_vm11, %v505_v62, %v507_v33 }
 0x162   : > { %v538_v45 = vadd.f32 %v522_v27, %v436_v15  ;;  %v438_v15 = vadd.f32 %v430_v57, %v382_v44 }
 0x163   : > { %v599_v46 = vpop.permute.xlu0 %598 }
 0x164   : > { %v509_v37 = vpop.permute.xlu1 %508 }
 0x167   : > { %v607_v1 = vpop.permute.xlu0 %606 }
 0x168   : > { %v517_v54 = vpop.permute.xlu1 %516 }
 0x16b   : > { %v503_v18 = vpop.permute.xlu0 %502 }
 0x16c   : > { %v520_v42 = vsel %vm518_vm11, %v501_v38, %v503_v18  ;;  %v521_v35 = vsel %vm518_vm11, %v503_v18, %v505_v62  ;;  %v601_v63 = vpop.permute.xlu1 %600  ;;  %v439_v62 = vadd.f32 %v431_v21, %v386_v16 }
 0x16d   : > { %v536_v10 = vadd.f32 %v520_v42, %v434_v58  ;;  %v537_v9 = vadd.f32 %v521_v35, %v435_v61  ;;  %v618_v6 = vsel %vm262_vm0, %v599_v46, %v601_v63  ;;  %v2807_v42 = vld [vmem:[#allocation24_spill] sm:$0xff] }
 0x16e   : > { %v634_v39 = vadd.f32 %v618_v6, %v535_v20  ;;  %v2809_v6 = vld [vmem:[#allocation21_spill] sm:$0xff] }
 0x16f   : > { %v603_v5 = vpop.permute.xlu0 %602 }
 0x170   : > { %v619_v55 = vsel %vm262_vm0, %v601_v63, %v603_v5  ;;  %v605_v31 = vpop.permute.xlu1 %604  ;;  %v726_v49 = vadd.f32 %v2215_v0, %v634_v39 }
 0x171   : > { %v635_v40 = vadd.f32 %v619_v55, %v536_v10  ;;  %v620_v41 = vsel %vm262_vm0, %v603_v5, %v605_v31  ;;  %v621_v43 = vsel %vm262_vm0, %v605_v31, %v607_v1  ;;  %v2808_v10 = vld [vmem:[#allocation20_spill] sm:$0xff] }
 0x172   : > { %v636_v59 = vadd.f32 %v620_v41, %v537_v9  ;;  %v637_v56 = vadd.f32 %v621_v43, %v538_v45  ;;  %v440_v45 = vadd.f32 %v432_v53, %v390_v47 }
 0x173   : > { %v511_v3 = vpop.permute.xlu0 %510  ;;  %v2608_v48 = vadd.f32 %v2803_v51, %v635_v40 }
 0x174   : > { %v523_v19 = vsel %vm518_vm11, %v509_v37, %v511_v3  ;;  %v609_v34 = vpop.permute.xlu1 %608  ;;  %v728_v26 = vadd.f32 %v2804_v50, %v636_v59  ;;  %v729_v38 = vadd.f32 %v2805_v12, %v637_v56  ;;  %v2810_v56 = vld [vmem:[#allocation12_spill] sm:$0xff] }
 0x175   : > { %v539_v0 = vadd.f32 %v523_v19, %v437_v8  ;;  %v1030_v8 = vrot.slane %v2810_v56, %v2046_v28 }
 0x177   : > { %v515_v60 = vpop.permute.xlu0 %514  ;;  %v1042_v50 = vmul.f32 %v1030_v8, %v2128_v14 }
 0x178   : > { %v526_v7 = vsel %vm518_vm11, %v515_v60, %v517_v54  ;;  %v617_v11 = vpop.permute.xlu1 %616 }
 0x179   : > { %v542_v4 = vadd.f32 %v526_v7, %v440_v45 }
 0x17b   : > { %v611_v20 = vpop.permute.xlu0 %610 }
 0x17c   : > { %v622_v33 = vsel %vm262_vm0, %v609_v34, %v611_v20  ;;  %v513_v27 = vpop.permute.xlu1 %512  ;;  %v1038_v34 = vmul.f32 %v1030_v8, %v2508_v25 }
 0x17d   : > { %v638_v46 = vadd.f32 %v622_v33, %v539_v0  ;;  %v524_v37 = vsel %vm518_vm11, %v511_v3, %v513_v27  ;;  %v525_v1 = vsel %vm518_vm11, %v513_v27, %v515_v60 }
 0x17e   : > { %v540_v22 = vadd.f32 %v524_v37, %v438_v15  ;;  %v541_v30 = vadd.f32 %v525_v1, %v439_v62  ;;  %v1069_v15 = vrot.slane %v1038_v34, 2  ;;  %v1070_v62 = vrot.slane %v1042_v50, 2 }
 0x17f   : > { %v615_v52 = vpop.permute.xlu0 %614  ;;  %v730_v2 = vadd.f32 %v2806_v13, %v638_v46 }
 0x180   : > { %v625_v36 = vsel %vm262_vm0, %v615_v52, %v617_v11  ;;  %v613_v54 = vpop.permute.xlu1 %612 }
 0x181   : > { %v641_v58 = vadd.f32 %v625_v36, %v542_v4  ;;  %v623_v44 = vsel %vm262_vm0, %v611_v20, %v613_v54  ;;  %v624_v16 = vsel %vm262_vm0, %v613_v54, %v615_v52 }
 0x182   : > { %v639_v47 = vadd.f32 %v623_v44, %v540_v22  ;;  %v640_v61 = vadd.f32 %v624_v16, %v541_v30  ;;  %v2811_v22 = vld [vmem:[#allocation17_spill] sm:$0xff]  ;;  %v2812_v44 = vld [vmem:[#allocation14_spill] sm:$0xff] }
 0x183   : > { %v827_v18 = vpop.permute.xlu0 %826  ;;  %v733_v35 = vadd.f32 %v2807_v42, %v641_v58 }
 0x184   : > { %v837_v63 = vpop.permute.xlu1 %836  ;;  %v731_v9 = vadd.f32 %v2808_v10, %v639_v47  ;;  %v732_v39 = vadd.f32 %v2809_v6, %v640_v61  ;;  %v1046_v47 = vmul.f32 %v1030_v8, %v2528_v32 }
 0x187   : > { %v835_v5 = vpop.permute.xlu0 %834 }
 0x188   : > { %v845_v17 = vpop.permute.xlu1 %844 }
 0x18b   : > { %v961_v55 = vpop.permute.xlu0 %960 }
 0x18c   : > { %v971_v31 = vpop.permute.xlu1 %970 }
 0x18f   : > { %v969_v40 = vpop.permute.xlu0 %968 }
 0x190   : > { %v829_v41 = vpop.permute.xlu1 %828 }
 0x191   : > { %v846_v51 = vsel %vm518_vm11, %v827_v18, %v829_v41 }
 0x192   : > { %v862_v12 = vadd.f32 %v846_v51, %v726_v49 }
 0x193   : > { %v831_v43 = vpop.permute.xlu0 %830 }
 0x194   : > { %v833_v59 = vpop.permute.xlu1 %832  ;;  %v847_v60 = vsel %vm518_vm11, %v829_v41, %v831_v43  ;;  %v1078_v41 = vrot.slane %v1046_v47, 2 }
 0x195   : > { %v848_v7 = vsel %vm518_vm11, %v831_v43, %v833_v59  ;;  %v849_v11 = vsel %vm518_vm11, %v833_v59, %v835_v5  ;;  %v863_v25 = vadd.f32 %v847_v60, %v2608_v48  ;;  %v1071_v48 = vsel %vm1059_vm10, %v1069_v15, %v1070_v62  ;;  %v2815_v59 = vld [vmem:[#allocation23_spill] sm:$0xff] }
 0x196   : > { %v864_v14 = vadd.f32 %v848_v7, %v728_v26  ;;  %v865_v49 = vadd.f32 %v849_v11, %v729_v38  ;;  %v1079_v50 = vsel %vm1059_vm10, %v1070_v62, %v1078_v41 }
 0x197   : > { %v839_v3 = vpop.permute.xlu0 %838 }
 0x198   : > { %v841_v19 = vpop.permute.xlu1 %840  ;;  %v850_v45 = vsel %vm518_vm11, %v837_v63, %v839_v3 }
 0x199   : > { %v851_v46 = vsel %vm518_vm11, %v839_v3, %v841_v19  ;;  %v866_v26 = vadd.f32 %v850_v45, %v730_v2 }
 0x19a   : > { %v867_v38 = vadd.f32 %v851_v46, %v731_v9  ;;  %v2814_v9 = vld [vmem:[#allocation22_spill] sm:$0xff] }
 0x19b   : > { %v843_v0 = vpop.permute.xlu0 %842 }
 0x19c   : > { %v853_v57 = vsel %vm518_vm11, %v843_v0, %v845_v17  ;;  %v963_v21 = vpop.permute.xlu1 %962  ;;  %v852_v61 = vsel %vm518_vm11, %v841_v19, %v843_v0  ;;  %v2816_v19 = vld [vmem:[#allocation25_spill] sm:$0xff] }
 0x19d   : > { %v869_v53 = vadd.f32 %v853_v57, %v733_v35  ;;  %v980_v20 = vsel %vm262_vm0, %v961_v55, %v963_v21  ;;  %v2813_v35 = vld [vmem:[#allocation18_spill] sm:$0xff]  ;;  %v868_v55 = vadd.f32 %v852_v61, %v732_v39 }
 0x19e   : > { %v996_v33 = vadd.f32 %v980_v20, %v862_v12 }
 0x19f   : > { %v965_v27 = vpop.permute.xlu0 %964 }
 0x1a0   : > { %v981_v37 = vsel %vm262_vm0, %v963_v21, %v965_v27  ;;  %v967_v1 = vpop.permute.xlu1 %966  ;;  %v1088_v30 = vadd.f32 %v2811_v22, %v996_v33 }
 0x1a1   : > { %v997_v4 = vadd.f32 %v981_v37, %v863_v25  ;;  %v982_v52 = vsel %vm262_vm0, %v965_v27, %v967_v1  ;;  %v983_v13 = vsel %vm262_vm0, %v967_v1, %v969_v40 }
 0x1a2   : > { %v998_v36 = vadd.f32 %v982_v52, %v864_v14  ;;  %v999_v54 = vadd.f32 %v983_v13, %v865_v49 }
 0x1a3   : > { %v973_v58 = vpop.permute.xlu0 %972  ;;  %v1089_v16 = vadd.f32 %v2812_v44, %v997_v4 }
 0x1a4   : > { %v984_v18 = vsel %vm262_vm0, %v971_v31, %v973_v58  ;;  %v975_v42 = vpop.permute.xlu1 %974  ;;  %v1090_v63 = vadd.f32 %v2813_v35, %v998_v36  ;;  %v1091_v10 = vadd.f32 %v1071_v48, %v999_v54 }
 0x1a5   : > { %v1000_v6 = vadd.f32 %v984_v18, %v866_v26  ;;  %v985_v5 = vsel %vm262_vm0, %v973_v58, %v975_v42 }
 0x1a6   : > { %v1001_v17 = vadd.f32 %v985_v5, %v867_v38 }
 0x1a7   : > { %v977_v2 = vpop.permute.xlu0 %976  ;;  %v1092_v40 = vadd.f32 %v2814_v9, %v1000_v6 }
 0x1a8   : > { %v986_v43 = vsel %vm262_vm0, %v975_v42, %v977_v2  ;;  %v979_v32 = vpop.permute.xlu1 %978  ;;  %v1093_v56 = vadd.f32 %v2815_v59, %v1001_v17 }
 0x1a9   : > { %v1002_v8 = vadd.f32 %v986_v43, %v868_v55  ;;  %v987_v31 = vsel %vm262_vm0, %v977_v2, %v979_v32 }
 0x1aa   : > { %v1003_v3 = vadd.f32 %v987_v31, %v869_v53 }
 0x1ab   : > { %v1189_v51 = vpop.permute.xlu0 %1188  ;;  %v1094_v34 = vadd.f32 %v2816_v19, %v1002_v8 }
 0x1ac   : > { %v1191_v12 = vpop.permute.xlu1 %1190  ;;  %v1095_v39 = vadd.f32 %v1079_v50, %v1003_v3  ;;  %v1436_v3 = vld [vmem:[%s2768_s4] sm:$0xf] }
 0x1ad   : > { %v1208_v15 = vsel %vm518_vm11, %v1189_v51, %v1191_v12 }
 0x1ae   : > { %v1224_v14 = vadd.f32 %v1208_v15, %v1088_v30 }
 0x1af   : > { %v1193_v0 = vpop.permute.xlu0 %1192 }
 0x1b0   : > { %v1195_v60 = vpop.permute.xlu1 %1194  ;;  %v1209_v53 = vsel %vm518_vm11, %v1191_v12, %v1193_v0 }
 0x1b1   : > { %v1210_v27 = vsel %vm518_vm11, %v1193_v0, %v1195_v60  ;;  %v1225_v46 = vadd.f32 %v1209_v53, %v1089_v16 }
 0x1b2   : > { %v1226_v1 = vadd.f32 %v1210_v27, %v1090_v63 }
 0x1b3   : > { %v1197_v7 = vpop.permute.xlu0 %1196 }
 0x1b4   : > { %v1199_v11 = vpop.permute.xlu1 %1198  ;;  %v1211_v22 = vsel %vm518_vm11, %v1195_v60, %v1197_v7 }
 0x1b5   : > { %v1227_v48 = vadd.f32 %v1211_v22, %v1091_v10  ;;  %v1406_v10 = vld [vmem:[%s2767_s3] sm:$0xf] }
 0x1b6   : > { %v2676_v32 = vrot.slane %v1406_v10, %v2040_v24 }
 0x1b7   : > { %v1201_v57 = vpop.permute.xlu0 %1200 }
 0x1b8   : > { %v1203_v21 = vpop.permute.xlu1 %1202  ;;  %v1212_v58 = vsel %vm518_vm11, %v1199_v11, %v1201_v57 }
 0x1b9   : > { %v1213_v61 = vsel %vm518_vm11, %v1201_v57, %v1203_v21  ;;  %v1228_v42 = vadd.f32 %v1212_v58, %v1092_v40  ;;  %v1441_v57 = vrot.slane %v1436_v3, %v2040_v24 }
 0x1ba   : > { %v1229_v6 = vadd.f32 %v1213_v61, %v1093_v56 }
 0x1bb   : > { %v1205_v20 = vpop.permute.xlu0 %1204 }
 0x1bc   : > { %v1207_v33 = vpop.permute.xlu1 %1206  ;;  %v1214_v5 = vsel %vm518_vm11, %v1203_v21, %v1205_v20  ;;  %v1415_v21 = vrot.slane %v1406_v10, %v2038_v23 }
 0x1bd   : > { %v1215_v2 = vsel %vm518_vm11, %v1205_v20, %v1207_v33  ;;  %v1230_v40 = vadd.f32 %v1214_v5, %v1094_v34 }
 0x1be   : > { %v1231_v31 = vadd.f32 %v1215_v2, %v1095_v39 }
 0x1bf   : > { %v1323_v25 = vpop.permute.xlu0 %1322 }
 0x1c0   : > { %v1325_v49 = vpop.permute.xlu1 %1324 }
 0x1c1   : > { %v1342_v62 = vsel %vm262_vm0, %v1323_v25, %v1325_v49 }
 0x1c2   : > { %v1358_v45 = vadd.f32 %v1342_v62, %v1224_v14  ;;  %v1419_v14 = vrot.slane %v1406_v10, %v2048_v29 }
 0x1c3   : > { %v1327_v37 = vpop.permute.xlu0 %1326 }
 0x1c4   : > { %v1374_v4 = vmul.f32 0.70710677, %v1358_v45  ;;  %v1343_v52 = vsel %vm262_vm0, %v1325_v49, %v1327_v37  ;;  %v1329_v13 = vpop.permute.xlu1 %1328  ;;  %v1366_v51 = vmul.f32 0.5, %v1358_v45  ;;  %v1445_v45 = vrot.slane %v1436_v3, %v2038_v23 }
 0x1c5   : > { %v1359_v36 = vadd.f32 %v1343_v52, %v1225_v46  ;;  %v1344_v30 = vsel %vm262_vm0, %v1327_v37, %v1329_v13  ;;  %v1423_v52 = vrot.slane %v1406_v10, %v2046_v28  ;;  %v1453_v23 = vrot.slane %v1436_v3, %v2046_v28 }
 0x1c6   : > { %1667 = verf.f32 %v1374_v4  ;;  %v1360_v54 = vadd.f32 %v1344_v30, %v1226_v1  ;;  %v1449_v1 = vrot.slane %v1436_v3, %v2048_v29  ;;  %v1683_v30 = vld [vmem:[%s2008_s12] sm:$0xff] }
 0x1c7   : > { %v1375_v26 = vmul.f32 0.70710677, %v1359_v36  ;;  %v1331_v38 = vpop.permute.xlu0 %1330  ;;  %v1367_v15 = vmul.f32 0.5, %v1359_v36 }
 0x1c8   : > { %v1376_v44 = vmul.f32 0.70710677, %v1360_v54  ;;  %v1345_v16 = vsel %vm262_vm0, %v1329_v13, %v1331_v38  ;;  %v1333_v47 = vpop.permute.xlu1 %1332  ;;  %v1368_v27 = vmul.f32 0.5, %v1360_v54 }
 0x1c9   : > { %1669 = verf.f32 %v1375_v26  ;;  %v1361_v18 = vadd.f32 %v1345_v16, %v1227_v48  ;;  %v1684_v16 = vld [vmem:[%s2008_s12 + $0x8] sm:$0xff] }
 0x1ca   : > { %1671 = verf.f32 %v1376_v44 }
 0x1cb   : > { %v1377_v35 = vmul.f32 0.70710677, %v1361_v18  ;;  %v1335_v63 = vpop.permute.xlu0 %1334  ;;  %v1369_v13 = vmul.f32 0.5, %v1361_v18 }
 0x1cc   : > { %v1346_v17 = vsel %vm262_vm0, %v1333_v47, %v1335_v63  ;;  %v1337_v55 = vpop.permute.xlu1 %1336 }
 0x1cd   : > { %1673 = verf.f32 %v1377_v35  ;;  %v1362_v9 = vadd.f32 %v1346_v17, %v1228_v42  ;;  %v1347_v41 = vsel %vm262_vm0, %v1335_v63, %v1337_v55  ;;  %v1685_v35 = vld [vmem:[%s2008_s12 + $0x10] sm:$0xff] }
 0x1ce   : > { %v1363_v43 = vadd.f32 %v1347_v41, %v1229_v6  ;;  %v1686_v41 = vld [vmem:[%s2008_s12 + $0x18] sm:$0xff] }
 0x1cf   : > { %v1378_v59 = vmul.f32 0.70710677, %v1362_v9  ;;  %v1339_v56 = vpop.permute.xlu0 %1338  ;;  %v1370_v18 = vmul.f32 0.5, %v1362_v9 }
 0x1d0   : > { %v1668_v8 = vpop.eup %1667  ;;  %v1379_v19 = vmul.f32 0.70710677, %v1363_v43  ;;  %v1348_v50 = vsel %vm262_vm0, %v1337_v55, %v1339_v56  ;;  %v1341_v12 = vpop.permute.xlu1 %1340  ;;  %v1371_v28 = vmul.f32 0.5, %v1363_v43 }
 0x1d1   : > { %v1390_v0 = vadd.f32 1.0, %v1668_v8  ;;  %1675 = verf.f32 %v1378_v59  ;;  %v1364_v60 = vadd.f32 %v1348_v50, %v1230_v40  ;;  %v1349_v34 = vsel %vm262_vm0, %v1339_v56, %v1341_v12  ;;  %v1687_v12 = vld [vmem:[%s2008_s12 + $0x20] sm:$0xff] }
 0x1d2   : > { %1677 = verf.f32 %v1379_v19  ;;  %v1365_v7 = vadd.f32 %v1349_v34, %v1231_v31 }
 0x1d3   : > { %v1670_v11 = vpop.eup %1669  ;;  %v1398_v39 = vmul.f32 %v1390_v0, %v1366_v51  ;;  %v1380_v20 = vmul.f32 0.70710677, %v1364_v60  ;;  %v1372_v9 = vmul.f32 0.5, %v1364_v60 }
 0x1d4   : > { %v1672_v33 = vpop.eup %1671  ;;  %v1391_v25 = vadd.f32 1.0, %v1670_v11  ;;  %v1381_v53 = vmul.f32 0.70710677, %v1365_v7  ;;  %v1373_v8 = vmul.f32 0.5, %v1365_v7 }
 0x1d5   : > { %v1428_v49 = vmul.f32 %v2676_v32, %v1398_v39  ;;  %v1392_v62 = vadd.f32 1.0, %v1672_v33  ;;  %1679 = verf.f32 %v1380_v20  ;;  %v1689_v39 = vld [vmem:[%s2008_s12 + $0x30] sm:$0xff]  ;;  %v1690_v20 = vld [vmem:[%s2008_s12 + $0x38] sm:$0xff] }
 0x1d6   : > { %v1399_v46 = vmul.f32 %v1391_v25, %v1367_v15  ;;  %1681 = verf.f32 %v1381_v53 }
 0x1d7   : > { %v1674_v24 = vpop.eup %1673  ;;  %v1458_v37 = vadd.f32 %v1441_v57, %v1428_v49  ;;  %v1400_v22 = vmul.f32 %v1392_v62, %v1368_v27 }
 0x1d8   : > { %v1429_v4 = vmul.f32 %v1415_v21, %v1399_v46  ;;  %v1393_v36 = vadd.f32 1.0, %v1674_v24 }
 0x1d9   : > { %v1466_v54 = vadd.f32 %v1683_v30, %v1458_v37  ;;  %v1430_v48 = vmul.f32 %v1419_v14, %v1400_v22 }
 0x1da   : > { %v1459_v26 = vadd.f32 %v1445_v45, %v1429_v4  ;;  %v1401_v38 = vmul.f32 %v1393_v36, %v1369_v13 }
 0x1db   : > { %v1676_v58 = vpop.eup %1675  ;;  %1474 = vst [vmem:[%s2694_s28] sm:$0xff] %v1466_v54  ;;  %v1460_v29 = vadd.f32 %v1449_v1, %v1430_v48 }
 0x1dc   : > { %v1678_v44 = vpop.eup %1677  ;;  %v1467_v47 = vadd.f32 %v1684_v16, %v1459_v26  ;;  %v1431_v61 = vmul.f32 %v1423_v52, %v1401_v38  ;;  %v1394_v42 = vadd.f32 1.0, %v1676_v58 }
 0x1dd   : > { %v1468_v63 = vadd.f32 %v1685_v35, %v1460_v29  ;;  %v1395_v6 = vadd.f32 1.0, %v1678_v44 }
 0x1de   : > { %1475 = vst [vmem:[%s2694_s28 + $0x8] sm:$0xff] %v1467_v47  ;;  %v1461_v5 = vadd.f32 %v1453_v23, %v1431_v61  ;;  %v1402_v10 = vmul.f32 %v1394_v42, %v1370_v18 }
 0x1df   : > { %v1680_v17 = vpop.eup %1679  ;;  %1476 = vst [vmem:[%s2694_s28 + $0x10] sm:$0xff] %v1468_v63  ;;  %v1403_v55 = vmul.f32 %v1395_v6, %v1371_v28 }
 0x1e0   : > { %v1682_v2 = vpop.eup %1681  ;;  %v1469_v40 = vadd.f32 %v1686_v41, %v1461_v5  ;;  %v1432_v59 = vmul.f32 %v2676_v32, %v1402_v10  ;;  %v1396_v56 = vadd.f32 1.0, %v1680_v17  ;;  %v1688_v32 = vld [vmem:[%s2008_s12 + $0x28] sm:$0xff] }
 0x1e1   : > { %v1433_v43 = vmul.f32 %v1415_v21, %v1403_v55  ;;  %v1397_v31 = vadd.f32 1.0, %v1682_v2 }
 0x1e2   : > { %1477 = vst [vmem:[%s2694_s28 + $0x18] sm:$0xff] %v1469_v40  ;;  %v1462_v3 = vadd.f32 %v1441_v57, %v1432_v59  ;;  %v1404_v51 = vmul.f32 %v1396_v56, %v1372_v9 }
 0x1e3   : > { %v1463_v19 = vadd.f32 %v1445_v45, %v1433_v43  ;;  %v1405_v50 = vmul.f32 %v1397_v31, %v1373_v8 }
 0x1e4   : > { %v1470_v0 = vadd.f32 %v1687_v12, %v1462_v3  ;;  %v1434_v34 = vmul.f32 %v1419_v14, %v1404_v51 }
 0x1e5   : > { %v1471_v60 = vadd.f32 %v1688_v32, %v1463_v19  ;;  %v1435_v11 = vmul.f32 %v1423_v52, %v1405_v50 }
 0x1e6   : > { %1478 = vst [vmem:[%s2694_s28 + $0x20] sm:$0xff] %v1470_v0  ;;  %v1464_v7 = vadd.f32 %v1449_v1, %v1434_v34 }
 0x1e7   : > { %1479 = vst [vmem:[%s2694_s28 + $0x28] sm:$0xff] %v1471_v60  ;;  %v1465_v57 = vadd.f32 %v1453_v23, %v1435_v11 }
 0x1e8   : > { %v1472_v21 = vadd.f32 %v1689_v39, %v1464_v7 }
 0x1e9   : > { %v1473_v33 = vadd.f32 %v1690_v20, %v1465_v57 }
 0x1ea   : > { %1480 = vst [vmem:[%s2694_s28 + $0x30] sm:$0xff] %v1472_v21 }
 0x1eb   : > { %1481 = vst [vmem:[%s2694_s28 + $0x38] sm:$0xff] %v1473_v33 }
 0x1ec   : > { %1762 = shalt.err (!%p1759_p7)
}
 0x1ed   : > { %s1763_s12 = scalar_lea.hbm %s2714_s26, 1024  ;;  %s1767_s13 = scalar_lea.hbm %s2769_s5, 2048 }
 0x1ee   : > { %p1764_p9 = scmp.ne.s32.totalorder %s2714_s26, %s1763_s12  ;;  %p1768_p5 = scmp.lt.u32.totalorder %s2714_s26, %s2769_s5 }
 0x1ef   : > { %p1769_p11 = scmp.lt.u32.totalorder %s1767_s13, %s1763_s12  ;;  %p1771_p4 = scmp.lt.u32.totalorder %s1763_s12, %s2714_s26 }
 0x1f0   : > { %p1765_p2 = pnand %p1764_p9, %p1954_p12 }
 0x1f1   : > { %p1770_p1 = por %p1769_p11, %p1768_p5 }
 0x1f2   : > { %p1766_p0 = pneg %p1765_p2 }
 0x1f3   : > { %p1772_p6 = por %p1771_p4, %p1770_p1 }
 0x1f5   : > { %p1773_p8 = pnand %p1772_p6, %p1766_p0 }
 0x1f7   : > { %1776 = shalt.err (!%p1773_p8)
}
 0x1f8   : > { %s1832_s27 = smov 512  }
 0x1f9   : > { %1607 = dma.vmem_to_hbm [thread:$0]  (%p1954_p12), %s2717_s17, 1024, %s2714_s26, %s1483_s22, %s1832_s27, %s1832_s27, %s1828_s24  }
 0x1fa PF: > { %s1511_s11 = sand.u32 1, %s1807_s18   ;;  %p2817_p10 = scmp.ne.s32.totalorder %s2777_s25, 0 }
 0x1fb   : > { %p2818_p13 = scmp.ge.s32.totalorder %s1819_s21, 2  ;;  %s1512_s14 = scalar_lea.sflag [#allocation5], %s1511_s11 }
 0x1fd   : > { %p1618_p3 = pnand %p2818_p13, %p2817_p10 }
 0x1ff   : > { %1802 = dma.done.wait (!%p1618_p3), %s1512_s14, 1024  }
 0x200   : > { %1804 = vsyncadd (!%p1618_p3), %s1512_s14, 4294966272  ;;  %p19_p7 = scmp.ge.s32.totalorder %s1919_s30, 4   ;;  %s2819_s18 = smov %s1811_s19 }
 0x201   : > { %s2820_s19 = smov %s1815_s20  ;;  %s2821_s20 = smov %s1950_s8 }
 0x202   : > { %s2822_s21 = smov %s1919_s30  ;;  %21 = sbr.rel (!%p19_p7) target bundleno = 6 (0x6), region = 97 }
 0x209   :  { %1517 = vsyncpa [#allocation4], 1 }
 0x20a   :  { %1519 = vsyncpa [#allocation4 + $0x1], 1 }
 0x20b   :  { %1520 = vsyncpa [#allocation7], 1 }
 0x20c   :  { %1521 = vsyncpa [#allocation5], 1 }
 0x20d   :  { %1523 = vsyncpa [#allocation5 + $0x1], 1 }

</bundles_post_ra>
